<compile_context>
chip_gen: v7x
topology: tpu7x:2x2x1
jax: 0.10.0
libtpu: 0.0.40
codegen_flags: <defaults>
</compile_context>

<pallas_src>
import jax
import jax.numpy as jnp
from jax.experimental import pallas as pl
from jax.experimental.pallas import tpu as pltpu

INPUT_SIZE = 28
HIDDEN = 64
OUT = 10

IP = 128        # input features padded to one full 128-lane group
HP = 128        # per-gate width padded to one full 128-lane group
GP = 4 * HP     # packed gates:  i | f | o | g   (sigmoid gates contiguous)
OUTP = 128      # output head padded for a lane-dense unmasked store


def _lstm_head_kernel(x_ref, wih_ref, b_ref, whh_ref, wout_ref, bout_ref,
                      out_ref, gx_ref):
    """Fused input projection + serial LSTM recurrence + final Linear.

    x_ref:    (T, Bp, IP)   time-major, zero-padded input
    wih_ref:  (IP, GP)      padded, pre-transposed W_ih (gate order i|f|o|g)
    b_ref:    (1, GP)       padded (b_ih + b_hh)
    whh_ref:  (HP, GP)      padded, pre-transposed W_hh
    wout_ref: (HP, OUTP)    padded, pre-transposed W_out
    bout_ref: (1, OUTP)     padded b_out
    out_ref:  (Bp, OUTP)
    gx_ref:   (T, Bp, GP)   VMEM scratch: per-step input-projection gates
    """
    T, Bp, _ = x_ref.shape

    # --- Input projection for ALL timesteps in one MXU matmul (fused here,
    #     so nothing but x / weights crosses HBM).
    x_flat = x_ref[...].reshape(T * Bp, IP)
    gx_ref[...] = (
        jnp.dot(x_flat, wih_ref[...], preferred_element_type=jnp.float32)
        + b_ref[...]
    ).reshape(T, Bp, GP)

    def act(gates):
        # Gate order i|f|o|g -> one fused sigmoid over the first 3 blocks,
        # one tanh over the last (fewer EUP launches on the serial chain).
        s = jax.nn.sigmoid(gates[:, :3 * HP])
        g = jnp.tanh(gates[:, 3 * HP:])
        return (s[:, 0 * HP:1 * HP], s[:, 1 * HP:2 * HP],
                s[:, 2 * HP:3 * HP], g)

    # --- Step 0 peeled: h0 = c0 = 0, so the recurrent matmul and the
    #     forget-gate term are identically zero.
    i, f, o, g = act(gx_ref[0])
    c = i * g
    h = o * jnp.tanh(c)

    # --- Remaining steps: only the recurrent matmul sits on the serial chain.
    def step(t, carry):
        h, c = carry
        gates = gx_ref[t] + jnp.dot(h, whh_ref[...],
                                    preferred_element_type=jnp.float32)
        i, f, o, g = act(gates)
        c = f * c + i * g
        h = o * jnp.tanh(c)
        return h, c

    h, _ = jax.lax.fori_loop(1, T, step, (h, c), unroll=True)

    # --- Final Linear on the last hidden state; lane-dense padded store.
    out_ref[...] = (
        jnp.dot(h, wout_ref[...], preferred_element_type=jnp.float32)
        + bout_ref[...]
    ).astype(out_ref.dtype)


def pack_params(raw):
    """Pack PyTorch-layout params into padded, pre-transposed kernel operands.

    Padding scheme: each gate block occupies 128 lanes (real weights in the
    first 64, zeros elsewhere); W_hh / W_out rows 64:128 are zero, so padded
    hidden lanes of h/c stay exactly 0 every step and never leak into real
    outputs. PyTorch gate order (i, f, g, o) is repacked as (i, f, o, g).
    """
    w_ih, w_hh, b_ih, b_hh, w_out, b_out = raw
    H = HIDDEN
    I = w_ih.shape[1]

    src_order = (0, 1, 3, 2)  # dst block k <- PyTorch gate src_order[k]

    wih_p = jnp.zeros((IP, GP), jnp.float32)
    whh_p = jnp.zeros((HP, GP), jnp.float32)
    b_p = jnp.zeros((1, GP), jnp.float32)
    for dst, src in enumerate(src_order):
        wih_p = wih_p.at[:I, dst * HP:dst * HP + H].set(
            w_ih[src * H:(src + 1) * H, :].T)
        whh_p = whh_p.at[:H, dst * HP:dst * HP + H].set(
            w_hh[src * H:(src + 1) * H, :].T)
        b_p = b_p.at[0, dst * HP:dst * HP + H].set(
            b_ih[src * H:(src + 1) * H] + b_hh[src * H:(src + 1) * H])

    wout_p = jnp.zeros((HP, OUTP), jnp.float32).at[:H, :OUT].set(w_out.T)
    bout_p = jnp.zeros((1, OUTP), jnp.float32).at[0, :OUT].set(b_out)
    return wih_p, b_p, whh_p, wout_p, bout_p


def rnn_forward(x, packed):
    """x: (B, T, INPUT_SIZE) float32 -> (B, OUT) float32."""
    wih_p, b_p, whh_p, wout_p, bout_p = packed
    B, T, I = x.shape
    Bp = max(8, -(-B // 8) * 8)  # pad batch to full sublane groups

    # Tiny (few KiB) time-major relayout + zero pad; the projection matmul
    # itself is fused into the kernel.
    x_p = jnp.zeros((T, Bp, IP), jnp.float32)
    x_p = x_p.at[:, :B, :I].set(jnp.transpose(x, (1, 0, 2)))

    flops = (2 * T * Bp * IP * GP            # fused input projection
             + 2 * (T - 1) * Bp * HP * GP    # recurrent matmuls (step 0 peeled)
             + 2 * Bp * HP * OUTP)           # output head
    transcendentals = T * Bp * 5 * HP        # 3 sigmoid + 2 tanh blocks / step
    bytes_accessed = 4 * (x_p.size + wih_p.size + b_p.size + whh_p.size
                          + wout_p.size + bout_p.size + Bp * OUTP)

    vmem_spec = pl.BlockSpec(memory_space=pltpu.MemorySpace.VMEM)

    out_pad = pl.pallas_call(
        _lstm_head_kernel,
        out_shape=jax.ShapeDtypeStruct((Bp, OUTP), jnp.float32),
        in_specs=[vmem_spec] * 6,
        out_specs=vmem_spec,
        scratch_shapes=[pltpu.VMEM((T, Bp, GP), jnp.float32)],
        cost_estimate=pl.CostEstimate(flops=flops,
                                      transcendentals=transcendentals,
                                      bytes_accessed=bytes_accessed),
    )(x_p, wih_p, b_p, whh_p, wout_p, bout_p)

    # TODO(synk): for large batch on v7x, add a batch grid axis
    # (dimension_semantics=("parallel",)) to use the second TensorCore.
    return out_pad[:B, :OUT]


def init_params(key, input_size=INPUT_SIZE, hidden=HIDDEN, out=OUT):
    """Deterministic init matching PyTorch's uniform(-1/sqrt(H), 1/sqrt(H))."""
    ks = jax.random.split(key, 6)
    bound = 1.0 / jnp.sqrt(jnp.float32(hidden))
    u = lambda k, shape: jax.random.uniform(k, shape, jnp.float32, -bound, bound)
    w_ih = u(ks[0], (4 * hidden, input_size))   # PyTorch gate order: i, f, g, o
    w_hh = u(ks[1], (4 * hidden, hidden))
    b_ih = u(ks[2], (4 * hidden,))
    b_hh = u(ks[3], (4 * hidden,))
    w_out = u(ks[4], (out, hidden))
    b_out = u(ks[5], (out,))
    return (w_ih, w_hh, b_ih, b_hh, w_out, b_out)


def rnn_reference(x, raw):
    """Pure-JAX reference of the PyTorch forward for verification."""
    w_ih, w_hh, b_ih, b_hh, w_out, b_out = raw
    B, T, _ = x.shape
    H = w_hh.shape[1]
    h = jnp.zeros((B, H), jnp.float32)
    c = jnp.zeros((B, H), jnp.float32)
    b = b_ih + b_hh
    for t in range(T):
        gates = x[:, t, :] @ w_ih.T + h @ w_hh.T + b
        i = jax.nn.sigmoid(gates[:, 0 * H:1 * H])
        f = jax.nn.sigmoid(gates[:, 1 * H:2 * H])
        g = jnp.tanh(gates[:, 2 * H:3 * H])
        o = jax.nn.sigmoid(gates[:, 3 * H:4 * H])
        c = f * c + i * g
        h = o * jnp.tanh(c)
    return h @ w_out.T + b_out


if __name__ == "__main__":
    key = jax.random.PRNGKey(0)
    k_param, k_x = jax.random.split(key)

    B, T = 2, 8
    raw = init_params(k_param)
    packed = pack_params(raw)
    x = jax.random.normal(k_x, (B, T, INPUT_SIZE), jnp.float32)

    out = rnn_forward(x, packed)
    out = jax.block_until_ready(out)

    ref = rnn_reference(x, raw)
    assert out.shape == (B, OUT)
    assert jnp.allclose(out, ref, atol=1e-4, rtol=1e-4), "mismatch vs reference"

    print("KERNEL_OK")
</pallas_src>

<mosaic_0001>
module attributes {stable_mosaic.version = 11 : i64} {
  func.func @_lstm_head_kernel(%arg0: memref<8x8x128xf32, #tpu.memory_space<vmem>>, %arg1: memref<128x512xf32, #tpu.memory_space<vmem>>, %arg2: memref<1x512xf32, #tpu.memory_space<vmem>>, %arg3: memref<128x512xf32, #tpu.memory_space<vmem>>, %arg4: memref<128x128xf32, #tpu.memory_space<vmem>>, %arg5: memref<1x128xf32, #tpu.memory_space<vmem>>, %arg6: memref<8x128xf32, #tpu.memory_space<vmem>>, %arg7: memref<8x8x512xf32, #tpu.memory_space<vmem>>) attributes {dimension_semantics = [], scalar_prefetch = 0 : i64, scratch_operands = 1 : i64, tpu.core_type = #tpu.core_type<tc>} {
    %c0 = arith.constant 0 : index
    %c0_0 = arith.constant 0 : index
    %c0_1 = arith.constant 0 : index
    %0 = vector.load %arg0[%c0, %c0_0, %c0_1] : memref<8x8x128xf32, #tpu.memory_space<vmem>>, vector<8x8x128xf32>
    %1 = vector.shape_cast %0 : vector<8x8x128xf32> to vector<64x128xf32>
    %c0_2 = arith.constant 0 : index
    %c0_3 = arith.constant 0 : index
    %2 = vector.load %arg1[%c0_2, %c0_3] : memref<128x512xf32, #tpu.memory_space<vmem>>, vector<128x512xf32>
    %cst = arith.constant dense<0.000000e+00> : vector<64x512xf32>
    %3 = tpu.matmul %1, %2, %cst {dimension_numbers = #tpu.dot_dimension_numbers<[1], [0], [0], [1], [0, 0, 1, 1], [], []>} : vector<64x128xf32>, vector<128x512xf32>, vector<64x512xf32> -> vector<64x512xf32>
    %c0_4 = arith.constant 0 : index
    %c0_5 = arith.constant 0 : index
    %4 = vector.load %arg2[%c0_4, %c0_5] : memref<1x512xf32, #tpu.memory_space<vmem>>, vector<1x512xf32>
    %5 = vector.broadcast %4 : vector<1x512xf32> to vector<64x512xf32>
    %6 = arith.addf %3, %5 : vector<64x512xf32>
    %7 = vector.shape_cast %6 : vector<64x512xf32> to vector<8x8x512xf32>
    %c0_6 = arith.constant 0 : index
    %c0_7 = arith.constant 0 : index
    %c0_8 = arith.constant 0 : index
    %8 = vector.load %arg7[%c0_6, %c0_7, %c0_8] : memref<8x8x512xf32, #tpu.memory_space<vmem>>, vector<8x8x512xf32>
    tpu.vector_store %arg7[%c0_6, %c0_7, %c0_8], %7 {strides = array<i32>} : memref<8x8x512xf32, #tpu.memory_space<vmem>>, vector<8x8x512xf32>,
    %c0_9 = arith.constant 0 : index
    %c0_10 = arith.constant 0 : index
    %c0_11 = arith.constant 0 : index
    %9 = vector.load %arg7[%c0_9, %c0_10, %c0_11] : memref<8x8x512xf32, #tpu.memory_space<vmem>>, vector<1x8x512xf32>
    %10 = vector.shape_cast %9 : vector<1x8x512xf32> to vector<8x512xf32>
    %11 = vector.extract_strided_slice %10 {offsets = [0, 0], sizes = [8, 384], strides = [1, 1]} : vector<8x512xf32> to vector<8x384xf32>
    %12 = arith.negf %11 : vector<8x384xf32>
    %13 = math.exp %12 : vector<8x384xf32>
    %cst_12 = arith.constant 1.000000e+00 : f32
    %14 = vector.broadcast %cst_12 : f32 to vector<8x384xf32>
    %15 = arith.addf %14, %13 : vector<8x384xf32>
    %16 = arith.divf %14, %15 : vector<8x384xf32>
    %17 = vector.extract_strided_slice %10 {offsets = [0, 384], sizes = [8, 128], strides = [1, 1]} : vector<8x512xf32> to vector<8x128xf32>
    %18 = math.tanh %17 : vector<8x128xf32>
    %19 = vector.extract_strided_slice %16 {offsets = [0, 0], sizes = [8, 128], strides = [1, 1]} : vector<8x384xf32> to vector<8x128xf32>
    %20 = vector.extract_strided_slice %16 {offsets = [0, 256], sizes = [8, 128], strides = [1, 1]} : vector<8x384xf32> to vector<8x128xf32>
    %21 = arith.mulf %19, %18 : vector<8x128xf32>
    %22 = math.tanh %21 : vector<8x128xf32>
    %23 = arith.mulf %20, %22 : vector<8x128xf32>
    %c1_i32 = arith.constant 1 : i32
    %24 = arith.index_cast %c1_i32 : i32 to index
    %c0_13 = arith.constant 0 : index
    %c0_14 = arith.constant 0 : index
    %25 = vector.load %arg7[%24, %c0_13, %c0_14] : memref<8x8x512xf32, #tpu.memory_space<vmem>>, vector<1x8x512xf32>
    %26 = vector.shape_cast %25 : vector<1x8x512xf32> to vector<8x512xf32>
    %c0_15 = arith.constant 0 : index
    %c0_16 = arith.constant 0 : index
    %27 = vector.load %arg3[%c0_15, %c0_16] : memref<128x512xf32, #tpu.memory_space<vmem>>, vector<128x512xf32>
    %cst_17 = arith.constant dense<0.000000e+00> : vector<8x512xf32>
    %28 = tpu.matmul %23, %27, %cst_17 {dimension_numbers = #tpu.dot_dimension_numbers<[1], [0], [0], [1], [0, 0, 1, 1], [], []>} : vector<8x128xf32>, vector<128x512xf32>, vector<8x512xf32> -> vector<8x512xf32>
    %29 = arith.addf %26, %28 : vector<8x512xf32>
    %30 = vector.extract_strided_slice %29 {offsets = [0, 0], sizes = [8, 384], strides = [1, 1]} : vector<8x512xf32> to vector<8x384xf32>
    %31 = arith.negf %30 : vector<8x384xf32>
    %32 = math.exp %31 : vector<8x384xf32>
    %cst_18 = arith.constant 1.000000e+00 : f32
    %33 = vector.broadcast %cst_18 : f32 to vector<8x384xf32>
    %34 = arith.addf %33, %32 : vector<8x384xf32>
    %35 = arith.divf %33, %34 : vector<8x384xf32>
    %36 = vector.extract_strided_slice %29 {offsets = [0, 384], sizes = [8, 128], strides = [1, 1]} : vector<8x512xf32> to vector<8x128xf32>
    %37 = math.tanh %36 : vector<8x128xf32>
    %38 = vector.extract_strided_slice %35 {offsets = [0, 0], sizes = [8, 128], strides = [1, 1]} : vector<8x384xf32> to vector<8x128xf32>
    %39 = vector.extract_strided_slice %35 {offsets = [0, 128], sizes = [8, 128], strides = [1, 1]} : vector<8x384xf32> to vector<8x128xf32>
    %40 = vector.extract_strided_slice %35 {offsets = [0, 256], sizes = [8, 128], strides = [1, 1]} : vector<8x384xf32> to vector<8x128xf32>
    %41 = arith.mulf %39, %21 : vector<8x128xf32>
    %42 = arith.mulf %38, %37 : vector<8x128xf32>
    %43 = arith.addf %41, %42 : vector<8x128xf32>
    %44 = math.tanh %43 : vector<8x128xf32>
    %45 = arith.mulf %40, %44 : vector<8x128xf32>
    %c2_i32 = arith.constant 2 : i32
    %46 = arith.index_cast %c2_i32 : i32 to index
    %c0_19 = arith.constant 0 : index
    %c0_20 = arith.constant 0 : index
    %47 = vector.load %arg7[%46, %c0_19, %c0_20] : memref<8x8x512xf32, #tpu.memory_space<vmem>>, vector<1x8x512xf32>
    %48 = vector.shape_cast %47 : vector<1x8x512xf32> to vector<8x512xf32>
    %c0_21 = arith.constant 0 : index
    %c0_22 = arith.constant 0 : index
    %49 = vector.load %arg3[%c0_21, %c0_22] : memref<128x512xf32, #tpu.memory_space<vmem>>, vector<128x512xf32>
    %cst_23 = arith.constant dense<0.000000e+00> : vector<8x512xf32>
    %50 = tpu.matmul %45, %49, %cst_23 {dimension_numbers = #tpu.dot_dimension_numbers<[1], [0], [0], [1], [0, 0, 1, 1], [], []>} : vector<8x128xf32>, vector<128x512xf32>, vector<8x512xf32> -> vector<8x512xf32>
    %51 = arith.addf %48, %50 : vector<8x512xf32>
    %52 = vector.extract_strided_slice %51 {offsets = [0, 0], sizes = [8, 384], strides = [1, 1]} : vector<8x512xf32> to vector<8x384xf32>
    %53 = arith.negf %52 : vector<8x384xf32>
    %54 = math.exp %53 : vector<8x384xf32>
    %cst_24 = arith.constant 1.000000e+00 : f32
    %55 = vector.broadcast %cst_24 : f32 to vector<8x384xf32>
    %56 = arith.addf %55, %54 : vector<8x384xf32>
    %57 = arith.divf %55, %56 : vector<8x384xf32>
    %58 = vector.extract_strided_slice %51 {offsets = [0, 384], sizes = [8, 128], strides = [1, 1]} : vector<8x512xf32> to vector<8x128xf32>
    %59 = math.tanh %58 : vector<8x128xf32>
    %60 = vector.extract_strided_slice %57 {offsets = [0, 0], sizes = [8, 128], strides = [1, 1]} : vector<8x384xf32> to vector<8x128xf32>
    %61 = vector.extract_strided_slice %57 {offsets = [0, 128], sizes = [8, 128], strides = [1, 1]} : vector<8x384xf32> to vector<8x128xf32>
    %62 = vector.extract_strided_slice %57 {offsets = [0, 256], sizes = [8, 128], strides = [1, 1]} : vector<8x384xf32> to vector<8x128xf32>
    %63 = arith.mulf %61, %43 : vector<8x128xf32>
    %64 = arith.mulf %60, %59 : vector<8x128xf32>
    %65 = arith.addf %63, %64 : vector<8x128xf32>
    %66 = math.tanh %65 : vector<8x128xf32>
    %67 = arith.mulf %62, %66 : vector<8x128xf32>
    %c3_i32 = arith.constant 3 : i32
    %68 = arith.index_cast %c3_i32 : i32 to index
    %c0_25 = arith.constant 0 : index
    %c0_26 = arith.constant 0 : index
    %69 = vector.load %arg7[%68, %c0_25, %c0_26] : memref<8x8x512xf32, #tpu.memory_space<vmem>>, vector<1x8x512xf32>
    %70 = vector.shape_cast %69 : vector<1x8x512xf32> to vector<8x512xf32>
    %c0_27 = arith.constant 0 : index
    %c0_28 = arith.constant 0 : index
    %71 = vector.load %arg3[%c0_27, %c0_28] : memref<128x512xf32, #tpu.memory_space<vmem>>, vector<128x512xf32>
    %cst_29 = arith.constant dense<0.000000e+00> : vector<8x512xf32>
    %72 = tpu.matmul %67, %71, %cst_29 {dimension_numbers = #tpu.dot_dimension_numbers<[1], [0], [0], [1], [0, 0, 1, 1], [], []>} : vector<8x128xf32>, vector<128x512xf32>, vector<8x512xf32> -> vector<8x512xf32>
    %73 = arith.addf %70, %72 : vector<8x512xf32>
    %74 = vector.extract_strided_slice %73 {offsets = [0, 0], sizes = [8, 384], strides = [1, 1]} : vector<8x512xf32> to vector<8x384xf32>
    %75 = arith.negf %74 : vector<8x384xf32>
    %76 = math.exp %75 : vector<8x384xf32>
    %cst_30 = arith.constant 1.000000e+00 : f32
    %77 = vector.broadcast %cst_30 : f32 to vector<8x384xf32>
    %78 = arith.addf %77, %76 : vector<8x384xf32>
    %79 = arith.divf %77, %78 : vector<8x384xf32>
    %80 = vector.extract_strided_slice %73 {offsets = [0, 384], sizes = [8, 128], strides = [1, 1]} : vector<8x512xf32> to vector<8x128xf32>
    %81 = math.tanh %80 : vector<8x128xf32>
    %82 = vector.extract_strided_slice %79 {offsets = [0, 0], sizes = [8, 128], strides = [1, 1]} : vector<8x384xf32> to vector<8x128xf32>
    %83 = vector.extract_strided_slice %79 {offsets = [0, 128], sizes = [8, 128], strides = [1, 1]} : vector<8x384xf32> to vector<8x128xf32>
    %84 = vector.extract_strided_slice %79 {offsets = [0, 256], sizes = [8, 128], strides = [1, 1]} : vector<8x384xf32> to vector<8x128xf32>
    %85 = arith.mulf %83, %65 : vector<8x128xf32>
    %86 = arith.mulf %82, %81 : vector<8x128xf32>
    %87 = arith.addf %85, %86 : vector<8x128xf32>
    %88 = math.tanh %87 : vector<8x128xf32>
    %89 = arith.mulf %84, %88 : vector<8x128xf32>
    %c4_i32 = arith.constant 4 : i32
    %90 = arith.index_cast %c4_i32 : i32 to index
    %c0_31 = arith.constant 0 : index
    %c0_32 = arith.constant 0 : index
    %91 = vector.load %arg7[%90, %c0_31, %c0_32] : memref<8x8x512xf32, #tpu.memory_space<vmem>>, vector<1x8x512xf32>
    %92 = vector.shape_cast %91 : vector<1x8x512xf32> to vector<8x512xf32>
    %c0_33 = arith.constant 0 : index
    %c0_34 = arith.constant 0 : index
    %93 = vector.load %arg3[%c0_33, %c0_34] : memref<128x512xf32, #tpu.memory_space<vmem>>, vector<128x512xf32>
    %cst_35 = arith.constant dense<0.000000e+00> : vector<8x512xf32>
    %94 = tpu.matmul %89, %93, %cst_35 {dimension_numbers = #tpu.dot_dimension_numbers<[1], [0], [0], [1], [0, 0, 1, 1], [], []>} : vector<8x128xf32>, vector<128x512xf32>, vector<8x512xf32> -> vector<8x512xf32>
    %95 = arith.addf %92, %94 : vector<8x512xf32>
    %96 = vector.extract_strided_slice %95 {offsets = [0, 0], sizes = [8, 384], strides = [1, 1]} : vector<8x512xf32> to vector<8x384xf32>
    %97 = arith.negf %96 : vector<8x384xf32>
    %98 = math.exp %97 : vector<8x384xf32>
    %cst_36 = arith.constant 1.000000e+00 : f32
    %99 = vector.broadcast %cst_36 : f32 to vector<8x384xf32>
    %100 = arith.addf %99, %98 : vector<8x384xf32>
    %101 = arith.divf %99, %100 : vector<8x384xf32>
    %102 = vector.extract_strided_slice %95 {offsets = [0, 384], sizes = [8, 128], strides = [1, 1]} : vector<8x512xf32> to vector<8x128xf32>
    %103 = math.tanh %102 : vector<8x128xf32>
    %104 = vector.extract_strided_slice %101 {offsets = [0, 0], sizes = [8, 128], strides = [1, 1]} : vector<8x384xf32> to vector<8x128xf32>
    %105 = vector.extract_strided_slice %101 {offsets = [0, 128], sizes = [8, 128], strides = [1, 1]} : vector<8x384xf32> to vector<8x128xf32>
    %106 = vector.extract_strided_slice %101 {offsets = [0, 256], sizes = [8, 128], strides = [1, 1]} : vector<8x384xf32> to vector<8x128xf32>
    %107 = arith.mulf %105, %87 : vector<8x128xf32>
    %108 = arith.mulf %104, %103 : vector<8x128xf32>
    %109 = arith.addf %107, %108 : vector<8x128xf32>
    %110 = math.tanh %109 : vector<8x128xf32>
    %111 = arith.mulf %106, %110 : vector<8x128xf32>
    %c5_i32 = arith.constant 5 : i32
    %112 = arith.index_cast %c5_i32 : i32 to index
    %c0_37 = arith.constant 0 : index
    %c0_38 = arith.constant 0 : index
    %113 = vector.load %arg7[%112, %c0_37, %c0_38] : memref<8x8x512xf32, #tpu.memory_space<vmem>>, vector<1x8x512xf32>
    %114 = vector.shape_cast %113 : vector<1x8x512xf32> to vector<8x512xf32>
    %c0_39 = arith.constant 0 : index
    %c0_40 = arith.constant 0 : index
    %115 = vector.load %arg3[%c0_39, %c0_40] : memref<128x512xf32, #tpu.memory_space<vmem>>, vector<128x512xf32>
    %cst_41 = arith.constant dense<0.000000e+00> : vector<8x512xf32>
    %116 = tpu.matmul %111, %115, %cst_41 {dimension_numbers = #tpu.dot_dimension_numbers<[1], [0], [0], [1], [0, 0, 1, 1], [], []>} : vector<8x128xf32>, vector<128x512xf32>, vector<8x512xf32> -> vector<8x512xf32>
    %117 = arith.addf %114, %116 : vector<8x512xf32>
    %118 = vector.extract_strided_slice %117 {offsets = [0, 0], sizes = [8, 384], strides = [1, 1]} : vector<8x512xf32> to vector<8x384xf32>
    %119 = arith.negf %118 : vector<8x384xf32>
    %120 = math.exp %119 : vector<8x384xf32>
    %cst_42 = arith.constant 1.000000e+00 : f32
    %121 = vector.broadcast %cst_42 : f32 to vector<8x384xf32>
    %122 = arith.addf %121, %120 : vector<8x384xf32>
    %123 = arith.divf %121, %122 : vector<8x384xf32>
    %124 = vector.extract_strided_slice %117 {offsets = [0, 384], sizes = [8, 128], strides = [1, 1]} : vector<8x512xf32> to vector<8x128xf32>
    %125 = math.tanh %124 : vector<8x128xf32>
    %126 = vector.extract_strided_slice %123 {offsets = [0, 0], sizes = [8, 128], strides = [1, 1]} : vector<8x384xf32> to vector<8x128xf32>
    %127 = vector.extract_strided_slice %123 {offsets = [0, 128], sizes = [8, 128], strides = [1, 1]} : vector<8x384xf32> to vector<8x128xf32>
    %128 = vector.extract_strided_slice %123 {offsets = [0, 256], sizes = [8, 128], strides = [1, 1]} : vector<8x384xf32> to vector<8x128xf32>
    %129 = arith.mulf %127, %109 : vector<8x128xf32>
    %130 = arith.mulf %126, %125 : vector<8x128xf32>
    %131 = arith.addf %129, %130 : vector<8x128xf32>
    %132 = math.tanh %131 : vector<8x128xf32>
    %133 = arith.mulf %128, %132 : vector<8x128xf32>
    %c6_i32 = arith.constant 6 : i32
    %134 = arith.index_cast %c6_i32 : i32 to index
    %c0_43 = arith.constant 0 : index
    %c0_44 = arith.constant 0 : index
    %135 = vector.load %arg7[%134, %c0_43, %c0_44] : memref<8x8x512xf32, #tpu.memory_space<vmem>>, vector<1x8x512xf32>
    %136 = vector.shape_cast %135 : vector<1x8x512xf32> to vector<8x512xf32>
    %c0_45 = arith.constant 0 : index
    %c0_46 = arith.constant 0 : index
    %137 = vector.load %arg3[%c0_45, %c0_46] : memref<128x512xf32, #tpu.memory_space<vmem>>, vector<128x512xf32>
    %cst_47 = arith.constant dense<0.000000e+00> : vector<8x512xf32>
    %138 = tpu.matmul %133, %137, %cst_47 {dimension_numbers = #tpu.dot_dimension_numbers<[1], [0], [0], [1], [0, 0, 1, 1], [], []>} : vector<8x128xf32>, vector<128x512xf32>, vector<8x512xf32> -> vector<8x512xf32>
    %139 = arith.addf %136, %138 : vector<8x512xf32>
    %140 = vector.extract_strided_slice %139 {offsets = [0, 0], sizes = [8, 384], strides = [1, 1]} : vector<8x512xf32> to vector<8x384xf32>
    %141 = arith.negf %140 : vector<8x384xf32>
    %142 = math.exp %141 : vector<8x384xf32>
    %cst_48 = arith.constant 1.000000e+00 : f32
    %143 = vector.broadcast %cst_48 : f32 to vector<8x384xf32>
    %144 = arith.addf %143, %142 : vector<8x384xf32>
    %145 = arith.divf %143, %144 : vector<8x384xf32>
    %146 = vector.extract_strided_slice %139 {offsets = [0, 384], sizes = [8, 128], strides = [1, 1]} : vector<8x512xf32> to vector<8x128xf32>
    %147 = math.tanh %146 : vector<8x128xf32>
    %148 = vector.extract_strided_slice %145 {offsets = [0, 0], sizes = [8, 128], strides = [1, 1]} : vector<8x384xf32> to vector<8x128xf32>
    %149 = vector.extract_strided_slice %145 {offsets = [0, 128], sizes = [8, 128], strides = [1, 1]} : vector<8x384xf32> to vector<8x128xf32>
    %150 = vector.extract_strided_slice %145 {offsets = [0, 256], sizes = [8, 128], strides = [1, 1]} : vector<8x384xf32> to vector<8x128xf32>
    %151 = arith.mulf %149, %131 : vector<8x128xf32>
    %152 = arith.mulf %148, %147 : vector<8x128xf32>
    %153 = arith.addf %151, %152 : vector<8x128xf32>
    %154 = math.tanh %153 : vector<8x128xf32>
    %155 = arith.mulf %150, %154 : vector<8x128xf32>
    %c7_i32 = arith.constant 7 : i32
    %156 = arith.index_cast %c7_i32 : i32 to index
    %c0_49 = arith.constant 0 : index
    %c0_50 = arith.constant 0 : index
    %157 = vector.load %arg7[%156, %c0_49, %c0_50] : memref<8x8x512xf32, #tpu.memory_space<vmem>>, vector<1x8x512xf32>
    %158 = vector.shape_cast %157 : vector<1x8x512xf32> to vector<8x512xf32>
    %c0_51 = arith.constant 0 : index
    %c0_52 = arith.constant 0 : index
    %159 = vector.load %arg3[%c0_51, %c0_52] : memref<128x512xf32, #tpu.memory_space<vmem>>, vector<128x512xf32>
    %cst_53 = arith.constant dense<0.000000e+00> : vector<8x512xf32>
    %160 = tpu.matmul %155, %159, %cst_53 {dimension_numbers = #tpu.dot_dimension_numbers<[1], [0], [0], [1], [0, 0, 1, 1], [], []>} : vector<8x128xf32>, vector<128x512xf32>, vector<8x512xf32> -> vector<8x512xf32>
    %161 = arith.addf %158, %160 : vector<8x512xf32>
    %162 = vector.extract_strided_slice %161 {offsets = [0, 0], sizes = [8, 384], strides = [1, 1]} : vector<8x512xf32> to vector<8x384xf32>
    %163 = arith.negf %162 : vector<8x384xf32>
    %164 = math.exp %163 : vector<8x384xf32>
    %cst_54 = arith.constant 1.000000e+00 : f32
    %165 = vector.broadcast %cst_54 : f32 to vector<8x384xf32>
    %166 = arith.addf %165, %164 : vector<8x384xf32>
    %167 = arith.divf %165, %166 : vector<8x384xf32>
    %168 = vector.extract_strided_slice %161 {offsets = [0, 384], sizes = [8, 128], strides = [1, 1]} : vector<8x512xf32> to vector<8x128xf32>
    %169 = math.tanh %168 : vector<8x128xf32>
    %170 = vector.extract_strided_slice %167 {offsets = [0, 0], sizes = [8, 128], strides = [1, 1]} : vector<8x384xf32> to vector<8x128xf32>
    %171 = vector.extract_strided_slice %167 {offsets = [0, 128], sizes = [8, 128], strides = [1, 1]} : vector<8x384xf32> to vector<8x128xf32>
    %172 = vector.extract_strided_slice %167 {offsets = [0, 256], sizes = [8, 128], strides = [1, 1]} : vector<8x384xf32> to vector<8x128xf32>
    %173 = arith.mulf %171, %153 : vector<8x128xf32>
    %174 = arith.mulf %170, %169 : vector<8x128xf32>
    %175 = arith.addf %173, %174 : vector<8x128xf32>
    %176 = math.tanh %175 : vector<8x128xf32>
    %177 = arith.mulf %172, %176 : vector<8x128xf32>
    %c7_i32_55 = arith.constant 7 : i32
    %c0_56 = arith.constant 0 : index
    %c0_57 = arith.constant 0 : index
    %178 = vector.load %arg4[%c0_56, %c0_57] : memref<128x128xf32, #tpu.memory_space<vmem>>, vector<128x128xf32>
    %cst_58 = arith.constant dense<0.000000e+00> : vector<8x128xf32>
    %179 = tpu.matmul %177, %178, %cst_58 {dimension_numbers = #tpu.dot_dimension_numbers<[1], [0], [0], [1], [0, 0, 1, 1], [], []>} : vector<8x128xf32>, vector<128x128xf32>, vector<8x128xf32> -> vector<8x128xf32>
    %c0_59 = arith.constant 0 : index
    %c0_60 = arith.constant 0 : index
    %180 = vector.load %arg5[%c0_59, %c0_60] : memref<1x128xf32, #tpu.memory_space<vmem>>, vector<1x128xf32>
    %181 = vector.broadcast %180 : vector<1x128xf32> to vector<8x128xf32>
    %182 = arith.addf %179, %181 : vector<8x128xf32>
    %c0_61 = arith.constant 0 : index
    %c0_62 = arith.constant 0 : index
    %183 = vector.load %arg6[%c0_61, %c0_62] : memref<8x128xf32, #tpu.memory_space<vmem>>, vector<8x128xf32>
    tpu.vector_store %arg6[%c0_61, %c0_62], %182 {strides = array<i32>} : memref<8x128xf32, #tpu.memory_space<vmem>>, vector<8x128xf32>,
    return
  }
}

</mosaic_0001>

<bundles_post_ra>
// kernel: tpu_custom_call.1
= control target key start
LH: loop header
LB: loop body
LE: loop exit
PB: predicated region body
PF: predicated region fallthrough
CT: control target
= control target key end

     0   :  { %11 = vsyncpa [#allocation4], 0  ;;  %s3302_s0 = inlined_call_operand.hbm [shape: f32[8,8,128], index: 0, kind: input, shape index: {}]   ;;  %s3303_s1 = inlined_call_operand.hbm [shape: f32[128,512], index: 1, kind: input, shape index: {}]   ;;  %s3304_s2 = inlined_call_operand.vmem [shape: f32[1,512], index: 2, kind: input, shape index: {}]   ;;  %s3305_s3 = inlined_call_operand.hbm [shape: f32[128,512], index: 3, kind: input, shape index: {}]   ;;  %s3306_s4 = inlined_call_operand.hbm [shape: f32[128,128], index: 4, kind: input, shape index: {}]   ;;  %s3307_s5 = inlined_call_operand.vmem [shape: f32[1,128], index: 5, kind: input, shape index: {}]   ;;  %s3308_s6 = inlined_call_operand.hbm [shape: f32[8,128], index: 6, kind: output, shape index: {}]  }
   0x1   :  { %12 = vsyncpa [#allocation7], 0 }
   0x2   :  { %13 = vsyncpa [#allocation10], 0 }
   0x3   :  { %14 = vsyncpa [#allocation5], 0  ;;  %s2772_s21 = smov [#allocation6]   ;;  %s2654_s25 = scalar_lea.hbm %s3303_s1, 8192 }
   0x4   :  { %s32_s22 = sshll.u32 %s2772_s21, 4  ;;  %p2655_p0 = scmp.ne.s32.totalorder %s3303_s1, %s2654_s25  ;;  %s33_s22 = int_to_ptr.vmem [resolvable:$true] %s32_s22 }
   0x5   :  { %p2658_p1 = scmp.lt.u32.totalorder %s2654_s25, %s3303_s1 }
   0x7   :  { %p2660_p2 = pnand %p2658_p1, %p2655_p0 }
   0x9   :  { %2663 = shalt.err (!%p2660_p2)
}
   0xa   :  { %s2664_s30 = scalar_lea.vmem %s33_s22, 8192  ;;  %p2669_p4 = scmp.lt.s32.totalorder %s33_s22, %s33_s22 }
   0xb   :  { %p2665_p3 = scmp.ne.s32.totalorder %s33_s22, %s2664_s30  ;;  %p2670_p5 = scmp.lt.s32.totalorder %s2664_s30, %s2664_s30 }
   0xd   :  { %p2671_p6 = por %p2670_p5, %p2669_p4 }
   0xf   :  { %p2672_p7 = pnand %p2671_p6, %p2665_p3 }
  0x11   :  { %2675 = shalt.err (!%p2672_p7)
}
  0x12   :  { %s2773_s7 = smov 512   ;;  %s2774_s8 = smov 32  }
  0x13   :  { %38 = dma.hbm_to_vmem [thread:$0]  %s3303_s1, 8192, %s33_s22, [#allocation7], %s2773_s7, %s2773_s7, %s2774_s8  }
  0x14   :  { %s2775_s11 = smov [#allocation3]   ;;  %s2676_s15 = scalar_lea.hbm %s3302_s0, 1024 }
  0x15   :  { %s20_s12 = sshll.u32 %s2775_s11, 4  ;;  %p2677_p8 = scmp.ne.s32.totalorder %s3302_s0, %s2676_s15  ;;  %s21_s12 = int_to_ptr.vmem [resolvable:$true] %s20_s12 }
  0x16   :  { %p2680_p9 = scmp.lt.u32.totalorder %s2676_s15, %s3302_s0 }
  0x18   :  { %p2682_p10 = pnand %p2680_p9, %p2677_p8 }
  0x1a   :  { %2685 = shalt.err (!%p2682_p10)
}
  0x1b   :  { %s2686_s20 = scalar_lea.vmem %s21_s12, 1024  ;;  %p2691_p12 = scmp.lt.s32.totalorder %s21_s12, %s21_s12 }
  0x1c   :  { %p2687_p11 = scmp.ne.s32.totalorder %s21_s12, %s2686_s20  ;;  %p2692_p13 = scmp.lt.s32.totalorder %s2686_s20, %s2686_s20 }
  0x1e   :  { %p2693_p0 = por %p2692_p13, %p2691_p12 }
  0x20   :  { %p2694_p1 = pnand %p2693_p0, %p2687_p11 }
  0x22   :  { %2697 = shalt.err (!%p2694_p1)
}
  0x23   :  { %s2776_s1 = smov 128   ;;  %s2777_s21 = smov 8  }
  0x24   :  { %26 = dma.hbm_to_vmem [thread:$0]  %s3302_s0, 1024, %s21_s12, [#allocation4], %s2776_s1, %s2776_s1, %s2777_s21  }
  0x25   :  { %s2778_s24 = smov [#allocation8]   ;;  %s2779_s26 = smov [#allocation9]  }
  0x26   :  { %s46_s25 = sshll.u32 %s2778_s24, 4  ;;  %s58_s27 = sshll.u32 %s2779_s26, 4  ;;  %s47_s25 = int_to_ptr.vmem [resolvable:$true] %s46_s25  ;;  %s2849_s27 = int_to_ptr.vmem [resolvable:$true] %s58_s27 }
  0x27   :  { %s2698_s30 = scalar_lea.hbm %s3305_s3, 8192 }
  0x28   :  { %p2699_p2 = scmp.ne.s32.totalorder %s3305_s3, %s2698_s30  ;;  %p2702_p3 = scmp.lt.u32.totalorder %s2698_s30, %s3305_s3 }
  0x2a   :  { %p2704_p4 = pnand %p2702_p3, %p2699_p2 }
  0x2c   :  { %2707 = shalt.err (!%p2704_p4)
}
  0x2d   :  { %s2708_s0 = scalar_lea.vmem %s47_s25, 8192  ;;  %p2713_p6 = scmp.lt.s32.totalorder %s47_s25, %s47_s25 }
  0x2e   :  { %p2709_p5 = scmp.ne.s32.totalorder %s47_s25, %s2708_s0  ;;  %p2714_p7 = scmp.lt.s32.totalorder %s2708_s0, %s2708_s0 }
  0x30   :  { %p2715_p8 = por %p2714_p7, %p2713_p6 }
  0x32   :  { %p2716_p9 = pnand %p2715_p8, %p2709_p5 }
  0x34   :  { %2719 = shalt.err (!%p2716_p9)
}
  0x35   :  { %52 = dma.hbm_to_vmem [thread:$0]  %s3305_s3, 8192, %s47_s25, [#allocation7], %s2773_s7, %s2773_s7, %s2774_s8  }
  0x36   :  { %s2720_s17 = scalar_lea.hbm %s3306_s4, 2048 }
  0x37   :  { %p2721_p10 = scmp.ne.s32.totalorder %s3306_s4, %s2720_s17  ;;  %p2724_p11 = scmp.lt.u32.totalorder %s2720_s17, %s3306_s4 }
  0x39   :  { %p2726_p12 = pnand %p2724_p11, %p2721_p10 }
  0x3b   :  { %2729 = shalt.err (!%p2726_p12)
}
  0x3c   :  { %s2730_s23 = scalar_lea.vmem %s2849_s27, 2048  ;;  %p2735_p0 = scmp.lt.s32.totalorder %s2849_s27, %s2849_s27 }
  0x3d   :  { %p2731_p13 = scmp.ne.s32.totalorder %s2849_s27, %s2730_s23  ;;  %p2736_p1 = scmp.lt.s32.totalorder %s2730_s23, %s2730_s23 }
  0x3f   :  { %p2737_p2 = por %p2736_p1, %p2735_p0 }
  0x41   :  { %p2738_p3 = pnand %p2737_p2, %p2731_p13 }
  0x43   :  { %2741 = shalt.err (!%p2738_p3)
}
  0x44   :  { %64 = dma.hbm_to_vmem [thread:$0]  %s3306_s4, 2048, %s2849_s27, [#allocation10], %s2776_s1, %s2776_s1, %s2777_s21  }
  0x45   :  { %2764 = dma.done.wait [#allocation4], 1024  }
  0x46   :  { %2765 = vsyncadd [#allocation4], 4294966272 }
  0x47   :  { %2766 = dma.done.wait [#allocation7], 16384  }
  0x48   :  { %2767 = vsyncadd [#allocation7], 4294950912 }
  0x49   :  { %2768 = dma.done.wait [#allocation10], 2048  }
  0x4a   :  { %2769 = vsyncadd [#allocation10], 4294965248  ;;  %v2780_v0 = vmov 0.0   ;;  %v88_v1 = vld [vmem:[#allocation6 + $0x8] sm:$0xff]  ;;  %v87_v3 = vld [vmem:[#allocation6] sm:$0xff]  ;;  %vm2782_vm0 = vmmov 0  }
  0x4b   :  { %237 = vmatprep.mubr.f32.mxu0 %v2780_v0  ;;  %350 = vmatprep.mubr.f32.mxu1 %v2780_v0  ;;  %v92_v2 = vld [vmem:[#allocation6 + $0x28] sm:$0xff]  ;;  %v91_v5 = vld [vmem:[#allocation6 + $0x20] sm:$0xff]  ;;  %v90_v16 = vld [vmem:[#allocation6 + $0x18] sm:$0xff]  ;;  %s2783_s21 = smov [#allocation11]  }
  0x4c   :  { %v1926_v4 = vpack.c.bf16 %v92_v2, %v88_v1  ;;  %v96_v6 = vld [vmem:[#allocation6 + $0x48] sm:$0xff]  ;;  %v1928_v8 = vpack.c.bf16 %v91_v5, %v87_v3  ;;  %v95_v10 = vld [vmem:[#allocation6 + $0x40] sm:$0xff]  ;;  %v94_v20 = vld [vmem:[#allocation6 + $0x38] sm:$0xff]  ;;  %s1839_s24 = sshll.u32 %s2783_s21, 4  ;;  %s1840_s24 = int_to_ptr.vmem [resolvable:$true] %s1839_s24 }
  0x4d   :  { %v100_v7 = vld [vmem:[#allocation6 + $0x68] sm:$0xff]  ;;  %v99_v11 = vld [vmem:[#allocation6 + $0x60] sm:$0xff]  ;;  %v1958_v22 = vpack.c.bf16 %v94_v20, %v90_v16  ;;  %v89_v23 = vld [vmem:[#allocation6 + $0x10] sm:$0xff]  ;;  %s2742_s25 = scalar_lea.vmem %s1840_s24, 128  ;;  %p2747_p5 = scmp.lt.s32.totalorder %s1840_s24, %s1840_s24 }
  0x4e   :  { %v1930_v9 = vpack.c.bf16 %v100_v7, %v96_v6  ;;  %v104_v12 = vld [vmem:[#allocation6 + $0x88] sm:$0xff]  ;;  %1927 = vmatprep.subr.bf16.mxu0 %v1926_v4  ;;  %v1932_v14 = vpack.c.bf16 %v99_v11, %v95_v10  ;;  %v103_v15 = vld [vmem:[#allocation6 + $0x80] sm:$0xff]  ;;  %v93_v24 = vld [vmem:[#allocation6 + $0x30] sm:$0xff]  ;;  %p2743_p4 = scmp.ne.s32.totalorder %s1840_s24, %s2742_s25  ;;  %p2748_p6 = scmp.lt.s32.totalorder %s2742_s25, %s2742_s25 }
  0x4f   :  { %v108_v13 = vld [vmem:[#allocation6 + $0xa8] sm:$0xff]  ;;  %1929 = vmatpush1.bf16.msra.mxu0 %v1928_v8  ;;  %v107_v18 = vld [vmem:[#allocation6 + $0xa0] sm:$0xff]  ;;  %v1960_v25 = vpack.c.bf16 %v93_v24, %v89_v23  ;;  %v98_v26 = vld [vmem:[#allocation6 + $0x58] sm:$0xff]  ;;  %1959 = vmatprep.subr.bf16.mxu1 %v1958_v22 }
  0x50   :  { %1931 = vmatprep.subr.bf16.mxu0 %v1930_v9  ;;  %v1934_v17 = vpack.c.bf16 %v108_v13, %v104_v12  ;;  %v112_v19 = vld [vmem:[#allocation6 + $0xc8] sm:$0xff]  ;;  %v102_v27 = vld [vmem:[#allocation6 + $0x78] sm:$0xff]  ;;  %v1936_v28 = vpack.c.bf16 %v107_v18, %v103_v15  ;;  %v111_v29 = vld [vmem:[#allocation6 + $0xc0] sm:$0xff]  ;;  %p2749_p7 = por %p2748_p6, %p2747_p5 }
  0x51   :  { %v116_v21 = vld [vmem:[#allocation6 + $0xe8] sm:$0xff]  ;;  %v1962_v30 = vpack.c.bf16 %v102_v27, %v98_v26  ;;  %v97_v31 = vld [vmem:[#allocation6 + $0x50] sm:$0xff]  ;;  %v115_v33 = vld [vmem:[#allocation6 + $0xe0] sm:$0xff]  ;;  %1961 = vmatpush1.bf16.msra.mxu1 %v1960_v25 }
  0x52   :  { %v1938_v32 = vpack.c.bf16 %v116_v21, %v112_v19  ;;  %v120_v34 = vld [vmem:[#allocation6 + $0x108] sm:$0xff]  ;;  %v101_v35 = vld [vmem:[#allocation6 + $0x70] sm:$0xff]  ;;  %v106_v38 = vld [vmem:[#allocation6 + $0x98] sm:$0xff]  ;;  %v1940_v43 = vpack.c.bf16 %v115_v33, %v111_v29  ;;  %p2750_p8 = pnand %p2749_p7, %p2743_p4 }
  0x53   :  { %1933 = vmatpush1.bf16.msra.mxu0 %v1932_v14  ;;  %v124_v36 = vld [vmem:[#allocation6 + $0x128] sm:$0xff]  ;;  %1963 = vmatprep.subr.bf16.mxu1 %v1962_v30  ;;  %v1964_v37 = vpack.c.bf16 %v101_v35, %v97_v31  ;;  %v110_v39 = vld [vmem:[#allocation6 + $0xb8] sm:$0xff]  ;;  %v105_v41 = vld [vmem:[#allocation6 + $0x90] sm:$0xff] }
  0x54   :  { %1935 = vmatprep.subr.bf16.mxu0 %v1934_v17  ;;  %v1966_v40 = vpack.c.bf16 %v110_v39, %v106_v38  ;;  %v109_v42 = vld [vmem:[#allocation6 + $0xb0] sm:$0xff]  ;;  %v119_v44 = vld [vmem:[#allocation6 + $0x100] sm:$0xff]  ;;  %v114_v45 = vld [vmem:[#allocation6 + $0xd8] sm:$0xff]  ;;  %v1942_v46 = vpack.c.bf16 %v124_v36, %v120_v34 }
  0x55   :  { %v123_v47 = vld [vmem:[#allocation6 + $0x120] sm:$0xff]  ;;  %1965 = vmatpush1.bf16.msra.mxu1 %v1964_v37  ;;  %v128_v48 = vld [vmem:[#allocation6 + $0x148] sm:$0xff]  ;;  %v1968_v49 = vpack.c.bf16 %v109_v42, %v105_v41  ;;  %v118_v50 = vld [vmem:[#allocation6 + $0xf8] sm:$0xff] }
  0x56   :  { %v132_v51 = vld [vmem:[#allocation6 + $0x168] sm:$0xff]  ;;  %1967 = vmatprep.subr.bf16.mxu1 %v1966_v40  ;;  %v1970_v52 = vpack.c.bf16 %v118_v50, %v114_v45  ;;  %v113_v53 = vld [vmem:[#allocation6 + $0xd0] sm:$0xff]  ;;  %v122_v55 = vld [vmem:[#allocation6 + $0x118] sm:$0xff]  ;;  %v1944_v57 = vpack.c.bf16 %v123_v47, %v119_v44 }
  0x57   :  { %1937 = vmatpush1.bf16.msra.mxu0 %v1936_v28  ;;  %v117_v54 = vld [vmem:[#allocation6 + $0xf0] sm:$0xff]  ;;  %v126_v56 = vld [vmem:[#allocation6 + $0x138] sm:$0xff]  ;;  %v1946_v58 = vpack.c.bf16 %v132_v51, %v128_v48  ;;  %v127_v59 = vld [vmem:[#allocation6 + $0x140] sm:$0xff] }
  0x58   :  { %1939 = vmatprep.subr.bf16.mxu0 %v1938_v32  ;;  %v131_v60 = vld [vmem:[#allocation6 + $0x160] sm:$0xff]  ;;  %v136_v61 = vld [vmem:[#allocation6 + $0x188] sm:$0xff]  ;;  %v1972_v62 = vpack.c.bf16 %v117_v54, %v113_v53  ;;  %v1974_v1 = vpack.c.bf16 %v126_v56, %v122_v55  ;;  %v121_v2 = vld [vmem:[#allocation6 + $0x110] sm:$0xff] }
  0x59   :  { %1969 = vmatpush1.bf16.msra.mxu1 %v1968_v49  ;;  %v140_v63 = vld [vmem:[#allocation6 + $0x1a8] sm:$0xff]  ;;  %v125_v3 = vld [vmem:[#allocation6 + $0x130] sm:$0xff]  ;;  %v130_v4 = vld [vmem:[#allocation6 + $0x158] sm:$0xff]  ;;  %v1948_v6 = vpack.c.bf16 %v131_v60, %v127_v59 }
  0x5a   :  { %1971 = vmatprep.subr.bf16.mxu1 %v1970_v52  ;;  %v134_v5 = vld [vmem:[#allocation6 + $0x178] sm:$0xff]  ;;  %v1950_v7 = vpack.c.bf16 %v140_v63, %v136_v61  ;;  %v135_v8 = vld [vmem:[#allocation6 + $0x180] sm:$0xff]  ;;  %v144_v10 = vld [vmem:[#allocation6 + $0x1c8] sm:$0xff]  ;;  %v1976_v11 = vpack.c.bf16 %v125_v3, %v121_v2 }
  0x5b   :  { %1941 = vmatpush1.bf16.msra.mxu0 %v1940_v43  ;;  %v139_v9 = vld [vmem:[#allocation6 + $0x1a0] sm:$0xff]  ;;  %v148_v12 = vld [vmem:[#allocation6 + $0x1e8] sm:$0xff]  ;;  %v1978_v13 = vpack.c.bf16 %v134_v5, %v130_v4  ;;  %v129_v14 = vld [vmem:[#allocation6 + $0x150] sm:$0xff] }
  0x5c   :  { %1943 = vmatprep.subr.bf16.mxu0 %v1942_v46  ;;  %v133_v15 = vld [vmem:[#allocation6 + $0x170] sm:$0xff]  ;;  %v138_v16 = vld [vmem:[#allocation6 + $0x198] sm:$0xff]  ;;  %v1952_v18 = vpack.c.bf16 %v139_v9, %v135_v8  ;;  %v1954_v19 = vpack.c.bf16 %v148_v12, %v144_v10  ;;  %v143_v20 = vld [vmem:[#allocation6 + $0x1c0] sm:$0xff] }
  0x5d   :  { %1973 = vmatpush1.bf16.msra.mxu1 %v1972_v62  ;;  %v142_v17 = vld [vmem:[#allocation6 + $0x1b8] sm:$0xff]  ;;  %v147_v21 = vld [vmem:[#allocation6 + $0x1e0] sm:$0xff]  ;;  %v1980_v22 = vpack.c.bf16 %v133_v15, %v129_v14  ;;  %v137_v24 = vld [vmem:[#allocation6 + $0x190] sm:$0xff] }
  0x5e   :  { %1975 = vmatprep.subr.bf16.mxu1 %v1974_v1  ;;  %v1982_v23 = vpack.c.bf16 %v142_v17, %v138_v16  ;;  %v141_v25 = vld [vmem:[#allocation6 + $0x1b0] sm:$0xff]  ;;  %v146_v26 = vld [vmem:[#allocation6 + $0x1d8] sm:$0xff]  ;;  %v1956_v28 = vpack.c.bf16 %v147_v21, %v143_v20  ;;  %v79_v33 = vld [vmem:[#allocation3] sm:$0xff] }
  0x5f   :  { %1945 = vmatpush1.bf16.msra.mxu0 %v1944_v57  ;;  %v150_v27 = vld [vmem:[#allocation6 + $0x1f8] sm:$0xff]  ;;  %v1984_v29 = vpack.c.bf16 %v141_v25, %v137_v24  ;;  %v145_v31 = vld [vmem:[#allocation6 + $0x1d0] sm:$0xff]  ;;  %v456_v35 = vld [vmem:[#allocation8 + $0x8] sm:$0xff] }
  0x60   :  { %1947 = vmatprep.subr.bf16.mxu0 %v1946_v58  ;;  %v1986_v30 = vpack.c.bf16 %v150_v27, %v146_v26  ;;  %v149_v32 = vld [vmem:[#allocation6 + $0x1f0] sm:$0xff]  ;;  %v460_v36 = vld [vmem:[#allocation8 + $0x28] sm:$0xff]  ;;  %v458_v37 = vld [vmem:[#allocation8 + $0x18] sm:$0xff] }
  0x61   :  { %1977 = vmatpush1.bf16.msra.mxu1 %v1976_v11  ;;  %v1988_v34 = vpack.c.bf16 %v149_v32, %v145_v31  ;;  %v2890_v38 = vpack.c.bf16 %v460_v36, %v456_v35  ;;  %v455_v39 = vld [vmem:[#allocation8] sm:$0xff]  ;;  %v462_v41 = vld [vmem:[#allocation8 + $0x38] sm:$0xff]  ;;  %v457_v44 = vld [vmem:[#allocation8 + $0x10] sm:$0xff] }
  0x62   :  { %1979 = vmatprep.subr.bf16.mxu1 %v1978_v13  ;;  %v459_v40 = vld [vmem:[#allocation8 + $0x20] sm:$0xff]  ;;  %v2894_v43 = vpack.c.bf16 %v462_v41, %v458_v37  ;;  %v461_v45 = vld [vmem:[#allocation8 + $0x30] sm:$0xff]  ;;  %v464_v47 = vld [vmem:[#allocation8 + $0x48] sm:$0xff] }
  0x63   :  { %1949 = vmatpush1.bf16.msra.mxu0 %v1948_v6  ;;  %v2892_v42 = vpack.c.bf16 %v459_v40, %v455_v39  ;;  %v2897_v46 = vpack.c.bf16 %v461_v45, %v457_v44  ;;  %v468_v48 = vld [vmem:[#allocation8 + $0x68] sm:$0xff]  ;;  %v466_v49 = vld [vmem:[#allocation8 + $0x58] sm:$0xff]  ;;  %v463_v51 = vld [vmem:[#allocation8 + $0x40] sm:$0xff] }
  0x64   :  { %1951 = vmatprep.subr.bf16.mxu0 %v1950_v7  ;;  %v2902_v50 = vpack.c.bf16 %v468_v48, %v464_v47  ;;  %v467_v52 = vld [vmem:[#allocation8 + $0x60] sm:$0xff]  ;;  %v470_v53 = vld [vmem:[#allocation8 + $0x78] sm:$0xff]  ;;  %v80_v54 = vld [vmem:[#allocation3 + $0x8] sm:$0xff] }
  0x65   :  { %1981 = vmatpush1.bf16.msra.mxu1 %v1980_v22  ;;  %v2904_v55 = vpack.c.bf16 %v467_v52, %v463_v51  ;;  %v2906_v56 = vpack.c.bf16 %v470_v53, %v466_v49  ;;  %v465_v57 = vld [vmem:[#allocation8 + $0x50] sm:$0xff]  ;;  %v472_v60 = vld [vmem:[#allocation8 + $0x88] sm:$0xff]  ;;  %v474_v62 = vld [vmem:[#allocation8 + $0x98] sm:$0xff] }
  0x66   :  { %1983 = vmatprep.subr.bf16.mxu1 %v1982_v23  ;;  %v469_v58 = vld [vmem:[#allocation8 + $0x70] sm:$0xff]  ;;  %v476_v61 = vld [vmem:[#allocation8 + $0xa8] sm:$0xff]  ;;  %v471_v1 = vld [vmem:[#allocation8 + $0x80] sm:$0xff] }
  0x67   :  { %1953 = vmatpush1.bf16.msra.mxu0 %v1952_v18  ;;  %v2909_v59 = vpack.c.bf16 %v469_v58, %v465_v57  ;;  %v2914_v63 = vpack.c.bf16 %v476_v61, %v472_v60  ;;  %v475_v2 = vld [vmem:[#allocation8 + $0xa0] sm:$0xff]  ;;  %v478_v3 = vld [vmem:[#allocation8 + $0xb8] sm:$0xff]  ;;  %v81_v4 = vld [vmem:[#allocation3 + $0x10] sm:$0xff] }
  0x68   :  { %1955 = vmatprep.subr.bf16.mxu0 %v1954_v19  ;;  %v2918_v5 = vpack.c.bf16 %v475_v2, %v471_v1  ;;  %v2920_v6 = vpack.c.bf16 %v478_v3, %v474_v62  ;;  %v473_v7 = vld [vmem:[#allocation8 + $0x90] sm:$0xff]  ;;  %v480_v10 = vld [vmem:[#allocation8 + $0xc8] sm:$0xff]  ;;  %v482_v12 = vld [vmem:[#allocation8 + $0xd8] sm:$0xff] }
  0x69   :  { %1985 = vmatpush1.bf16.msra.mxu1 %v1984_v29  ;;  %v477_v8 = vld [vmem:[#allocation8 + $0xb0] sm:$0xff]  ;;  %v484_v11 = vld [vmem:[#allocation8 + $0xe8] sm:$0xff]  ;;  %v479_v14 = vld [vmem:[#allocation8 + $0xc0] sm:$0xff] }
  0x6a   :  { %1987 = vmatprep.subr.bf16.mxu1 %v1986_v30  ;;  %v2923_v9 = vpack.c.bf16 %v477_v8, %v473_v7  ;;  %v2928_v13 = vpack.c.bf16 %v484_v11, %v480_v10  ;;  %v483_v15 = vld [vmem:[#allocation8 + $0xe0] sm:$0xff]  ;;  %v486_v16 = vld [vmem:[#allocation8 + $0xf8] sm:$0xff]  ;;  %v481_v20 = vld [vmem:[#allocation8 + $0xd0] sm:$0xff] }
  0x6b   :  { %1957 = vmatpush1.bf16.msra.mxu0 %v1956_v28  ;;  %v82_v17 = vld [vmem:[#allocation3 + $0x18] sm:$0xff]  ;;  %v2932_v18 = vpack.c.bf16 %v483_v15, %v479_v14  ;;  %v2934_v19 = vpack.c.bf16 %v486_v16, %v482_v12  ;;  %v485_v21 = vld [vmem:[#allocation8 + $0xf0] sm:$0xff]  ;;  %v488_v23 = vld [vmem:[#allocation8 + $0x108] sm:$0xff] }
  0x6c   :  { %1991 = vmatprep.subr.bf16.mxu0 %v2890_v38  ;;  %v2937_v22 = vpack.c.bf16 %v485_v21, %v481_v20  ;;  %v492_v24 = vld [vmem:[#allocation8 + $0x128] sm:$0xff]  ;;  %v490_v25 = vld [vmem:[#allocation8 + $0x118] sm:$0xff]  ;;  %v487_v27 = vld [vmem:[#allocation8 + $0x100] sm:$0xff] }
  0x6d   :  { %1989 = vmatpush1.bf16.msra.mxu1 %v1988_v34  ;;  %v2942_v26 = vpack.c.bf16 %v492_v24, %v488_v23  ;;  %v491_v28 = vld [vmem:[#allocation8 + $0x120] sm:$0xff]  ;;  %v494_v29 = vld [vmem:[#allocation8 + $0x138] sm:$0xff]  ;;  %v493_v34 = vld [vmem:[#allocation8 + $0x130] sm:$0xff] }
  0x6e   :  { %238 = vmatmul.mubr.f32.vlgmr.msra.gmra.mrb[0].mxu0 %v79_v33  ;;  %2023 = vmatprep.subr.bf16.mxu1 %v2894_v43  ;;  %v83_v30 = vld [vmem:[#allocation3 + $0x20] sm:$0xff]  ;;  %v2946_v31 = vpack.c.bf16 %v491_v28, %v487_v27  ;;  %v2948_v32 = vpack.c.bf16 %v494_v29, %v490_v25  ;;  %v496_v36 = vld [vmem:[#allocation8 + $0x148] sm:$0xff]  ;;  %v498_v39 = vld [vmem:[#allocation8 + $0x158] sm:$0xff]  ;;  %v153_v29 = vlaneseq }
  0x6f   :  { %243 = vmatprep.mubr.f32.mxu0 %v2780_v0  ;;  %1993 = vmatpush1.bf16.msra.mxu0 %v2892_v42  ;;  %v500_v37 = vld [vmem:[#allocation8 + $0x168] sm:$0xff]  ;;  %v495_v41 = vld [vmem:[#allocation8 + $0x140] sm:$0xff]  ;;  %v502_v45 = vld [vmem:[#allocation8 + $0x178] sm:$0xff] }
  0x70   :  { %351 = vmatmul.mubr.f32.vlgmr.msra.gmra.mrb[0].mxu1 %v79_v33  ;;  %1995 = vmatprep.subr.bf16.mxu0 %v2902_v50  ;;  %v489_v33 = vld [vmem:[#allocation8 + $0x110] sm:$0xff]  ;;  %v2956_v40 = vpack.c.bf16 %v500_v37, %v496_v36  ;;  %v499_v44 = vld [vmem:[#allocation8 + $0x160] sm:$0xff]  ;;  %v84_v47 = vld [vmem:[#allocation3 + $0x28] sm:$0xff]  ;;  %v2962_v49 = vpack.c.bf16 %v502_v45, %v498_v39 }
  0x71   :  { %356 = vmatprep.mubr.f32.mxu1 %v2780_v0  ;;  %2025 = vmatpush1.bf16.msra.mxu1 %v2897_v46  ;;  %v2951_v35 = vpack.c.bf16 %v493_v34, %v489_v33  ;;  %v2960_v48 = vpack.c.bf16 %v499_v44, %v495_v41  ;;  %v497_v51 = vld [vmem:[#allocation8 + $0x150] sm:$0xff]  ;;  %v508_v57 = vld [vmem:[#allocation8 + $0x1a8] sm:$0xff]  ;;  %v503_v61 = vld [vmem:[#allocation8 + $0x180] sm:$0xff] }
  0x72   :  { %244 = vmatmul.mubr.f32.gmra.mrb[2].mxu0 %v80_v54  ;;  %2027 = vmatprep.subr.bf16.mxu1 %v2906_v56  ;;  %v501_v52 = vld [vmem:[#allocation8 + $0x170] sm:$0xff]  ;;  %v507_v62 = vld [vmem:[#allocation8 + $0x1a0] sm:$0xff]  ;;  %v506_v1 = vld [vmem:[#allocation8 + $0x198] sm:$0xff] }
  0x73   :  { %1997 = vmatpush1.bf16.msra.mxu0 %v2904_v55  ;;  %249 = vmatprep.mubr.f32.mxu0 %v2780_v0  ;;  %v2965_v53 = vpack.c.bf16 %v501_v52, %v497_v51  ;;  %v85_v58 = vld [vmem:[#allocation3 + $0x30] sm:$0xff]  ;;  %v2972_v2 = vpack.c.bf16 %v507_v62, %v503_v61  ;;  %v510_v3 = vld [vmem:[#allocation8 + $0x1b8] sm:$0xff]  ;;  %v512_v11 = vld [vmem:[#allocation8 + $0x1c8] sm:$0xff] }
  0x74   :  { %357 = vmatmul.mubr.f32.gmra.mrb[2].mxu1 %v80_v54  ;;  %1999 = vmatprep.subr.bf16.mxu0 %v2914_v63  ;;  %v504_v54 = vld [vmem:[#allocation8 + $0x188] sm:$0xff]  ;;  %v509_v7 = vld [vmem:[#allocation8 + $0x1b0] sm:$0xff]  ;;  %v2976_v8 = vpack.c.bf16 %v510_v3, %v506_v1  ;;  %v86_v14 = vld [vmem:[#allocation3 + $0x38] sm:$0xff] }
  0x75   :  { %2029 = vmatpush1.bf16.msra.mxu1 %v2909_v59  ;;  %362 = vmatprep.mubr.f32.mxu1 %v2780_v0  ;;  %v2968_v60 = vpack.c.bf16 %v508_v57, %v504_v54  ;;  %v516_v12 = vld [vmem:[#allocation8 + $0x1e8] sm:$0xff]  ;;  %v511_v16 = vld [vmem:[#allocation8 + $0x1c0] sm:$0xff]  ;;  %v514_v20 = vld [vmem:[#allocation8 + $0x1d8] sm:$0xff] }
  0x76   :  { %250 = vmatmul.mubr.f32.gmra.mrb[4].mxu0 %v81_v4  ;;  %2031 = vmatprep.subr.bf16.mxu1 %v2920_v6  ;;  %v2981_v15 = vpack.c.bf16 %v516_v12, %v512_v11  ;;  %v518_v23 = vld [vmem:[#allocation8 + $0x1f8] sm:$0xff]  ;;  %v513_v24 = vld [vmem:[#allocation8 + $0x1d0] sm:$0xff]  ;;  %v3008_v34 = vld [vmem:[%s3304_s2] sm:$0xf] }
  0x77   :  { %2001 = vmatpush1.bf16.msra.mxu0 %v2918_v5  ;;  %255 = vmatprep.mubr.f32.mxu0 %v2780_v0  ;;  %v517_v25 = vld [vmem:[#allocation8 + $0x1f0] sm:$0xff]  ;;  %v2988_v27 = vpack.c.bf16 %v518_v23, %v514_v20 }
  0x78   :  { %363 = vmatmul.mubr.f32.gmra.mrb[4].mxu1 %v81_v4  ;;  %2003 = vmatprep.subr.bf16.mxu0 %v2928_v13  ;;  %v505_v4 = vld [vmem:[#allocation8 + $0x190] sm:$0xff]  ;;  %v2992_v28 = vpack.c.bf16 %v517_v25, %v513_v24 }
  0x79   :  { %2033 = vmatpush1.bf16.msra.mxu1 %v2923_v9  ;;  %368 = vmatprep.mubr.f32.mxu1 %v2780_v0  ;;  %v2978_v10 = vpack.c.bf16 %v509_v7, %v505_v4 }
  0x7a   :  { %256 = vmatmul.mubr.f32.gmra.mrb[6].mxu0 %v82_v17  ;;  %2035 = vmatprep.subr.bf16.mxu1 %v2934_v19 }
  0x7b   :  { %2005 = vmatpush1.bf16.msra.mxu0 %v2932_v18  ;;  %261 = vmatprep.mubr.f32.mxu0 %v2780_v0 }
  0x7c   :  { %369 = vmatmul.mubr.f32.gmra.mrb[6].mxu1 %v82_v17  ;;  %2007 = vmatprep.subr.bf16.mxu0 %v2942_v26  ;;  %v515_v17 = vld [vmem:[#allocation8 + $0x1e0] sm:$0xff] }
  0x7d   :  { %2037 = vmatpush1.bf16.msra.mxu1 %v2937_v22  ;;  %374 = vmatprep.mubr.f32.mxu1 %v2780_v0  ;;  %v2984_v21 = vpack.c.bf16 %v515_v17, %v511_v16 }
  0x7e   :  { %262 = vmatmul.mubr.f32.gmra.mrb[8].mxu0 %v83_v30  ;;  %2039 = vmatprep.subr.bf16.mxu1 %v2948_v32 }
  0x7f   :  { %2009 = vmatpush1.bf16.msra.mxu0 %v2946_v31  ;;  %267 = vmatprep.mubr.f32.mxu0 %v2780_v0 }
  0x80   :  { %375 = vmatmul.mubr.f32.gmra.mrb[8].mxu1 %v83_v30  ;;  %2011 = vmatprep.subr.bf16.mxu0 %v2956_v40  ;;  %v3002_v30 = vshrl.u32 %v153_v29, 7 }
  0x81   :  { %2041 = vmatpush1.bf16.msra.mxu1 %v2951_v35  ;;  %380 = vmatprep.mubr.f32.mxu1 %v2780_v0 }
  0x82   :  { %268 = vmatmul.mubr.f32.gmra.mrb[10].mxu0 %v84_v47  ;;  %2043 = vmatprep.subr.bf16.mxu1 %v2962_v49  ;;  %v155_v33 = vsub.s32 0, %v3002_v30  ;;  %v163_v37 = vsub.s32 2, %v3002_v30  ;;  %v167_v52 = vsub.s32 3, %v3002_v30  ;;  %v159_v23 = vsub.s32 1, %v3002_v30 }
  0x83   :  { %2013 = vmatpush1.bf16.msra.mxu0 %v2960_v48  ;;  %273 = vmatprep.mubr.f32.mxu0 %v2780_v0 }
  0x84   :  { %381 = vmatmul.mubr.f32.gmra.mrb[10].mxu1 %v84_v47  ;;  %2015 = vmatprep.subr.bf16.mxu0 %v2968_v60  ;;  %v3011_v36 = vrot.slane %v3008_v34, %v155_v33  ;;  %v3016_v45 = vrot.slane %v3008_v34, %v163_v37  ;;  %v3021_v61 = vrot.slane %v3008_v34, %v167_v52 }
  0x85   :  { %2045 = vmatpush1.bf16.msra.mxu1 %v2965_v53  ;;  %386 = vmatprep.mubr.f32.mxu1 %v2780_v0  ;;  %v3063_v24 = vrot.slane %v3008_v34, %v159_v23 }
  0x86   :  { %274 = vmatmul.mubr.f32.gmra.mrb[12].mxu0 %v85_v58  ;;  %2047 = vmatprep.subr.bf16.mxu1 %v2976_v8 }
  0x87   :  { %2017 = vmatpush1.bf16.msra.mxu0 %v2972_v2  ;;  %279 = vmatprep.mubr.f32.mxu0 %v2780_v0 }
  0x88   :  { %387 = vmatmul.mubr.f32.gmra.mrb[12].mxu1 %v85_v58  ;;  %2019 = vmatprep.subr.bf16.mxu0 %v2981_v15 }
  0x89   :  { %2049 = vmatpush1.bf16.msra.mxu1 %v2978_v10  ;;  %392 = vmatprep.mubr.f32.mxu1 %v2780_v0 }
  0x8a   :  { %280 = vmatmul.mubr.f32.gmra.mrb[14].mxu0 %v86_v14  ;;  %2051 = vmatprep.subr.bf16.mxu1 %v2988_v27 }
  0x8b   :  { %2021 = vmatpush1.bf16.msra.mxu0 %v2984_v21  ;;  %583 = vmatprep.mubr.f32.mxu0 %v2780_v0 }
  0x8c   :  { %393 = vmatmul.mubr.f32.gmra.mrb[14].mxu1 %v86_v14  ;;  %2055 = vmatprep.subr.bf16.mxu0 %v2890_v38 }
  0x8d   :  { %2053 = vmatpush1.bf16.msra.mxu1 %v2992_v28  ;;  %654 = vmatprep.mubr.f32.mxu1 %v2780_v0 }
  0x8e   :  { %2087 = vmatprep.subr.bf16.mxu1 %v2894_v43 }
 0x141   :  { %v239_v39 = vpop.f32.mrb[0].mxu0 }
 0x142   :  { %v240_v41 = vadd.f32 %v239_v39, %v3011_v36  ;;  %v241_v44 = vpop.f32.mrb[1].mxu0 }
 0x143   :  { %v352_v51 = vpop.f32.mrb[0].mxu1 }
 0x144   :  { %v1850_v47 = vmul.f32 -1.442695, %v240_v41  ;;  %v353_v54 = vadd.f32 %v352_v51, %v3016_v45  ;;  %v354_v57 = vpop.f32.mrb[1].mxu1 }
 0x145   :  { %v355_v62 = vadd.f32 %v354_v57, %v3021_v61 }
 0x146   :  { %2530 = vpow2.f32 %v1850_v47  ;;  %v1851_v58 = vmul.f32 -1.442695, %v353_v54 }
 0x148   :  { %2532 = vpow2.f32 %v1851_v58 }
 0x149   :  { %2534 = vtanh.f32 %v355_v62 }
 0x150   :  { %v2531_v1 = vpop.eup %2530 }
 0x151   :  { %v440_v3 = vadd.f32 1.0, %v2531_v1 }
 0x152   :  { %v2533_v4 = vpop.eup %2532 }
 0x153   :  { %2536 = vrcp.f32 %v440_v3  ;;  %v441_v7 = vadd.f32 1.0, %v2533_v4  ;;  %v2535_v11 = vpop.eup %2534 }
 0x155   :  { %2538 = vrcp.f32 %v441_v7 }
 0x15d   :  { %v2537_v12 = vpop.eup %2536 }
 0x15e   :  { %v3024_v14 = vmul.f32 %v2537_v12, %v2535_v11 }
 0x15f   :  { %v2539_v16 = vpop.eup %2538 }
 0x160   :  { %2540 = vtanh.f32 %v3024_v14 }
 0x16a   :  { %v2541_v17 = vpop.eup %2540 }
 0x16b   :  { %v449_v20 = vmul.f32 %v2541_v17, %v2539_v16 }
 0x16d   :  { %584 = vmatmul.mubr.f32.vlgmr.msra.gmra.mrb[2].mxu0 %v449_v20  ;;  %655 = vmatmul.mubr.f32.vlgmr.msra.gmra.mrb[2].mxu1 %v449_v20 }
 0x16e   :  { %2057 = vmatpush1.bf16.msra.mxu0 %v2892_v42  ;;  %2089 = vmatpush1.bf16.msra.mxu1 %v2897_v46 }
 0x16f   :  { %2059 = vmatprep.subr.bf16.mxu0 %v2902_v50  ;;  %2091 = vmatprep.subr.bf16.mxu1 %v2906_v56 }
 0x170   :  { %758 = vmatprep.mubr.f32.mxu0 %v2780_v0  ;;  %829 = vmatprep.mubr.f32.mxu1 %v2780_v0 }
 0x172   :  { %2061 = vmatpush1.bf16.msra.mxu0 %v2904_v55  ;;  %2093 = vmatpush1.bf16.msra.mxu1 %v2909_v59 }
 0x173   :  { %2063 = vmatprep.subr.bf16.mxu0 %v2914_v63  ;;  %2095 = vmatprep.subr.bf16.mxu1 %v2920_v6 }
 0x176   :  { %2065 = vmatpush1.bf16.msra.mxu0 %v2918_v5  ;;  %2097 = vmatpush1.bf16.msra.mxu1 %v2923_v9 }
 0x177   :  { %2067 = vmatprep.subr.bf16.mxu0 %v2928_v13  ;;  %2099 = vmatprep.subr.bf16.mxu1 %v2934_v19 }
 0x17a   :  { %2069 = vmatpush1.bf16.msra.mxu0 %v2932_v18  ;;  %2101 = vmatpush1.bf16.msra.mxu1 %v2937_v22 }
 0x17b   :  { %2071 = vmatprep.subr.bf16.mxu0 %v2942_v26  ;;  %2103 = vmatprep.subr.bf16.mxu1 %v2948_v32 }
 0x17e   :  { %2073 = vmatpush1.bf16.msra.mxu0 %v2946_v31  ;;  %2105 = vmatpush1.bf16.msra.mxu1 %v2951_v35 }
 0x17f   :  { %2075 = vmatprep.subr.bf16.mxu0 %v2956_v40  ;;  %2107 = vmatprep.subr.bf16.mxu1 %v2962_v49 }
 0x182   :  { %2077 = vmatpush1.bf16.msra.mxu0 %v2960_v48  ;;  %2109 = vmatpush1.bf16.msra.mxu1 %v2965_v53 }
 0x183   :  { %2079 = vmatprep.subr.bf16.mxu0 %v2968_v60  ;;  %2111 = vmatprep.subr.bf16.mxu1 %v2976_v8 }
 0x186   :  { %2081 = vmatpush1.bf16.msra.mxu0 %v2972_v2  ;;  %2113 = vmatpush1.bf16.msra.mxu1 %v2978_v10 }
 0x187   :  { %2083 = vmatprep.subr.bf16.mxu0 %v2981_v15  ;;  %2115 = vmatprep.subr.bf16.mxu1 %v2988_v27 }
 0x18a   :  { %2085 = vmatpush1.bf16.msra.mxu0 %v2984_v21  ;;  %2117 = vmatpush1.bf16.msra.mxu1 %v2992_v28 }
 0x18b   :  { %2119 = vmatprep.subr.bf16.mxu0 %v2890_v38  ;;  %2151 = vmatprep.subr.bf16.mxu1 %v2894_v43 }
 0x240   :  { %v585_v25 = vpop.f32.mrb[2].mxu0  ;;  %v656_v29 = vpop.f32.mrb[2].mxu1 }
 0x241   :  { %v2462_v33 = vadd.f32 %v585_v25, %v3011_v36  ;;  %v587_v37 = vpop.f32.mrb[3].mxu0  ;;  %v658_v39 = vpop.f32.mrb[3].mxu1  ;;  %v2476_v51 = vadd.f32 %v656_v29, %v3016_v45 }
 0x242   :  { %v2463_v41 = vadd.f32 %v587_v37, %v3063_v24  ;;  %v2477_v52 = vadd.f32 %v658_v39, %v3021_v61 }
 0x243   :  { %v1852_v44 = vmul.f32 -1.442695, %v2462_v33  ;;  %v1854_v30 = vmul.f32 -1.442695, %v2476_v51 }
 0x244   :  { %v1853_v47 = vmul.f32 -1.442695, %v2463_v41 }
 0x245   :  { %2542 = vpow2.f32 %v1852_v44 }
 0x246   :  { %2544 = vpow2.f32 %v1853_v47 }
 0x247   :  { %2546 = vtanh.f32 %v2477_v52 }
 0x248   :  { %2548 = vpow2.f32 %v1854_v30 }
 0x24f   :  { %v2543_v54 = vpop.eup %2542 }
 0x250   :  { %v674_v34 = vadd.f32 1.0, %v2543_v54  ;;  %v2545_v57 = vpop.eup %2544 }
 0x251   :  { %v675_v58 = vadd.f32 1.0, %v2545_v57  ;;  %v2547_v62 = vpop.eup %2546 }
 0x252   :  { %2550 = vrcp.f32 %v674_v34  ;;  %v2549_v1 = vpop.eup %2548 }
 0x253   :  { %2552 = vrcp.f32 %v675_v58  ;;  %v676_v11 = vadd.f32 1.0, %v2549_v1 }
 0x255   :  { %2554 = vrcp.f32 %v676_v11 }
 0x25c   :  { %v2551_v3 = vpop.eup %2550 }
 0x25d   :  { %v685_v4 = vmul.f32 %v2551_v3, %v2547_v62  ;;  %v2553_v7 = vpop.eup %2552 }
 0x25e   :  { %v684_v12 = vmul.f32 %v2553_v7, %v3024_v14 }
 0x25f   :  { %v2555_v17 = vpop.eup %2554 }
 0x260   :  { %v3070_v16 = vadd.f32 %v685_v4, %v684_v12 }
 0x262   :  { %2556 = vtanh.f32 %v3070_v16 }
 0x26c   :  { %v2557_v20 = vpop.eup %2556 }
 0x26d   :  { %v688_v23 = vmul.f32 %v2557_v20, %v2555_v17 }
 0x26f   :  { %759 = vmatmul.mubr.f32.vlgmr.msra.gmra.mrb[4].mxu0 %v688_v23  ;;  %830 = vmatmul.mubr.f32.vlgmr.msra.gmra.mrb[4].mxu1 %v688_v23 }
 0x270   :  { %2121 = vmatpush1.bf16.msra.mxu0 %v2892_v42  ;;  %2153 = vmatpush1.bf16.msra.mxu1 %v2897_v46 }
 0x271   :  { %2123 = vmatprep.subr.bf16.mxu0 %v2902_v50  ;;  %2155 = vmatprep.subr.bf16.mxu1 %v2906_v56 }
 0x272   :  { %933 = vmatprep.mubr.f32.mxu0 %v2780_v0  ;;  %1004 = vmatprep.mubr.f32.mxu1 %v2780_v0 }
 0x274   :  { %2125 = vmatpush1.bf16.msra.mxu0 %v2904_v55  ;;  %2157 = vmatpush1.bf16.msra.mxu1 %v2909_v59 }
 0x275   :  { %2127 = vmatprep.subr.bf16.mxu0 %v2914_v63  ;;  %2159 = vmatprep.subr.bf16.mxu1 %v2920_v6 }
 0x278   :  { %2129 = vmatpush1.bf16.msra.mxu0 %v2918_v5  ;;  %2161 = vmatpush1.bf16.msra.mxu1 %v2923_v9 }
 0x279   :  { %2131 = vmatprep.subr.bf16.mxu0 %v2928_v13  ;;  %2163 = vmatprep.subr.bf16.mxu1 %v2934_v19 }
 0x27c   :  { %2133 = vmatpush1.bf16.msra.mxu0 %v2932_v18  ;;  %2165 = vmatpush1.bf16.msra.mxu1 %v2937_v22 }
 0x27d   :  { %2135 = vmatprep.subr.bf16.mxu0 %v2942_v26  ;;  %2167 = vmatprep.subr.bf16.mxu1 %v2948_v32 }
 0x280   :  { %2137 = vmatpush1.bf16.msra.mxu0 %v2946_v31  ;;  %2169 = vmatpush1.bf16.msra.mxu1 %v2951_v35 }
 0x281   :  { %2139 = vmatprep.subr.bf16.mxu0 %v2956_v40  ;;  %2171 = vmatprep.subr.bf16.mxu1 %v2962_v49 }
 0x284   :  { %2141 = vmatpush1.bf16.msra.mxu0 %v2960_v48  ;;  %2173 = vmatpush1.bf16.msra.mxu1 %v2965_v53 }
 0x285   :  { %2143 = vmatprep.subr.bf16.mxu0 %v2968_v60  ;;  %2175 = vmatprep.subr.bf16.mxu1 %v2976_v8 }
 0x288   :  { %2145 = vmatpush1.bf16.msra.mxu0 %v2972_v2  ;;  %2177 = vmatpush1.bf16.msra.mxu1 %v2978_v10 }
 0x289   :  { %2147 = vmatprep.subr.bf16.mxu0 %v2981_v15  ;;  %2179 = vmatprep.subr.bf16.mxu1 %v2988_v27 }
 0x28c   :  { %2149 = vmatpush1.bf16.msra.mxu0 %v2984_v21  ;;  %2181 = vmatpush1.bf16.msra.mxu1 %v2992_v28 }
 0x28d   :  { %2183 = vmatprep.subr.bf16.mxu0 %v2890_v38  ;;  %2215 = vmatprep.subr.bf16.mxu1 %v2894_v43 }
 0x342   :  { %v760_v14 = vpop.f32.mrb[4].mxu0  ;;  %v831_v25 = vpop.f32.mrb[4].mxu1 }
 0x343   :  { %v2464_v29 = vadd.f32 %v760_v14, %v3011_v36  ;;  %v762_v33 = vpop.f32.mrb[5].mxu0  ;;  %v833_v37 = vpop.f32.mrb[5].mxu1  ;;  %v2478_v47 = vadd.f32 %v831_v25, %v3016_v45 }
 0x344   :  { %v2465_v39 = vadd.f32 %v762_v33, %v3063_v24  ;;  %v2479_v51 = vadd.f32 %v833_v37, %v3021_v61 }
 0x345   :  { %v1855_v41 = vmul.f32 -1.442695, %v2464_v29  ;;  %v1857_v52 = vmul.f32 -1.442695, %v2478_v47 }
 0x346   :  { %v1856_v44 = vmul.f32 -1.442695, %v2465_v39 }
 0x347   :  { %2558 = vpow2.f32 %v1855_v41 }
 0x348   :  { %2560 = vpow2.f32 %v1856_v44 }
 0x349   :  { %2562 = vtanh.f32 %v2479_v51 }
 0x34a   :  { %2564 = vpow2.f32 %v1857_v52 }
 0x351   :  { %v2559_v30 = vpop.eup %2558 }
 0x352   :  { %v849_v54 = vadd.f32 1.0, %v2559_v30  ;;  %v2561_v34 = vpop.eup %2560 }
 0x353   :  { %v850_v57 = vadd.f32 1.0, %v2561_v34  ;;  %v2563_v58 = vpop.eup %2562 }
 0x354   :  { %2566 = vrcp.f32 %v849_v54  ;;  %v2565_v62 = vpop.eup %2564 }
 0x355   :  { %2568 = vrcp.f32 %v850_v57  ;;  %v851_v7 = vadd.f32 1.0, %v2565_v62 }
 0x357   :  { %2570 = vrcp.f32 %v851_v7 }
 0x35e   :  { %v2567_v1 = vpop.eup %2566 }
 0x35f   :  { %v860_v3 = vmul.f32 %v2567_v1, %v2563_v58  ;;  %v2569_v4 = vpop.eup %2568 }
 0x360   :  { %v859_v11 = vmul.f32 %v2569_v4, %v3070_v16 }
 0x361   :  { %v2571_v17 = vpop.eup %2570 }
 0x362   :  { %v3112_v12 = vadd.f32 %v860_v3, %v859_v11 }
 0x364   :  { %2572 = vtanh.f32 %v3112_v12 }
 0x36e   :  { %v2573_v20 = vpop.eup %2572 }
 0x36f   :  { %v863_v23 = vmul.f32 %v2573_v20, %v2571_v17 }
 0x371   :  { %934 = vmatmul.mubr.f32.vlgmr.msra.gmra.mrb[6].mxu0 %v863_v23  ;;  %1005 = vmatmul.mubr.f32.vlgmr.msra.gmra.mrb[6].mxu1 %v863_v23 }
 0x372   :  { %2185 = vmatpush1.bf16.msra.mxu0 %v2892_v42  ;;  %2217 = vmatpush1.bf16.msra.mxu1 %v2897_v46 }
 0x373   :  { %2187 = vmatprep.subr.bf16.mxu0 %v2902_v50  ;;  %2219 = vmatprep.subr.bf16.mxu1 %v2906_v56 }
 0x374   :  { %1108 = vmatprep.mubr.f32.mxu0 %v2780_v0  ;;  %1179 = vmatprep.mubr.f32.mxu1 %v2780_v0 }
 0x376   :  { %2189 = vmatpush1.bf16.msra.mxu0 %v2904_v55  ;;  %2221 = vmatpush1.bf16.msra.mxu1 %v2909_v59 }
 0x377   :  { %2191 = vmatprep.subr.bf16.mxu0 %v2914_v63  ;;  %2223 = vmatprep.subr.bf16.mxu1 %v2920_v6 }
 0x37a   :  { %2193 = vmatpush1.bf16.msra.mxu0 %v2918_v5  ;;  %2225 = vmatpush1.bf16.msra.mxu1 %v2923_v9 }
 0x37b   :  { %2195 = vmatprep.subr.bf16.mxu0 %v2928_v13  ;;  %2227 = vmatprep.subr.bf16.mxu1 %v2934_v19 }
 0x37e   :  { %2197 = vmatpush1.bf16.msra.mxu0 %v2932_v18  ;;  %2229 = vmatpush1.bf16.msra.mxu1 %v2937_v22 }
 0x37f   :  { %2199 = vmatprep.subr.bf16.mxu0 %v2942_v26  ;;  %2231 = vmatprep.subr.bf16.mxu1 %v2948_v32 }
 0x382   :  { %2201 = vmatpush1.bf16.msra.mxu0 %v2946_v31  ;;  %2233 = vmatpush1.bf16.msra.mxu1 %v2951_v35 }
 0x383   :  { %2203 = vmatprep.subr.bf16.mxu0 %v2956_v40  ;;  %2235 = vmatprep.subr.bf16.mxu1 %v2962_v49 }
 0x386   :  { %2205 = vmatpush1.bf16.msra.mxu0 %v2960_v48  ;;  %2237 = vmatpush1.bf16.msra.mxu1 %v2965_v53 }
 0x387   :  { %2207 = vmatprep.subr.bf16.mxu0 %v2968_v60  ;;  %2239 = vmatprep.subr.bf16.mxu1 %v2976_v8 }
 0x38a   :  { %2209 = vmatpush1.bf16.msra.mxu0 %v2972_v2  ;;  %2241 = vmatpush1.bf16.msra.mxu1 %v2978_v10 }
 0x38b   :  { %2211 = vmatprep.subr.bf16.mxu0 %v2981_v15  ;;  %2243 = vmatprep.subr.bf16.mxu1 %v2988_v27 }
 0x38e   :  { %2213 = vmatpush1.bf16.msra.mxu0 %v2984_v21  ;;  %2245 = vmatpush1.bf16.msra.mxu1 %v2992_v28 }
 0x38f   :  { %2247 = vmatprep.subr.bf16.mxu0 %v2890_v38  ;;  %2279 = vmatprep.subr.bf16.mxu1 %v2894_v43 }
 0x444   :  { %v935_v16 = vpop.f32.mrb[6].mxu0  ;;  %v1006_v14 = vpop.f32.mrb[6].mxu1 }
 0x445   :  { %v2466_v25 = vadd.f32 %v935_v16, %v3011_v36  ;;  %v937_v29 = vpop.f32.mrb[7].mxu0  ;;  %v1008_v33 = vpop.f32.mrb[7].mxu1  ;;  %v2480_v44 = vadd.f32 %v1006_v14, %v3016_v45 }
 0x446   :  { %v2467_v37 = vadd.f32 %v937_v29, %v3063_v24  ;;  %v2481_v47 = vadd.f32 %v1008_v33, %v3021_v61 }
 0x447   :  { %v1858_v39 = vmul.f32 -1.442695, %v2466_v25  ;;  %v1860_v51 = vmul.f32 -1.442695, %v2480_v44 }
 0x448   :  { %v1859_v41 = vmul.f32 -1.442695, %v2467_v37 }
 0x449   :  { %2574 = vpow2.f32 %v1858_v39 }
 0x44a   :  { %2576 = vpow2.f32 %v1859_v41 }
 0x44b   :  { %2578 = vtanh.f32 %v2481_v47 }
 0x44c   :  { %2580 = vpow2.f32 %v1860_v51 }
 0x453   :  { %v2575_v52 = vpop.eup %2574 }
 0x454   :  { %v1024_v30 = vadd.f32 1.0, %v2575_v52  ;;  %v2577_v54 = vpop.eup %2576 }
 0x455   :  { %v1025_v34 = vadd.f32 1.0, %v2577_v54  ;;  %v2579_v57 = vpop.eup %2578 }
 0x456   :  { %2582 = vrcp.f32 %v1024_v30  ;;  %v2581_v58 = vpop.eup %2580 }
 0x457   :  { %2584 = vrcp.f32 %v1025_v34  ;;  %v1026_v4 = vadd.f32 1.0, %v2581_v58 }
 0x459   :  { %2586 = vrcp.f32 %v1026_v4 }
 0x460   :  { %v2583_v62 = vpop.eup %2582 }
 0x461   :  { %v1035_v1 = vmul.f32 %v2583_v62, %v2579_v57  ;;  %v2585_v3 = vpop.eup %2584 }
 0x462   :  { %v1034_v7 = vmul.f32 %v2585_v3, %v3112_v12 }
 0x463   :  { %v2587_v17 = vpop.eup %2586 }
 0x464   :  { %v3154_v11 = vadd.f32 %v1035_v1, %v1034_v7 }
 0x466   :  { %2588 = vtanh.f32 %v3154_v11 }
 0x470   :  { %v2589_v20 = vpop.eup %2588 }
 0x471   :  { %v1038_v23 = vmul.f32 %v2589_v20, %v2587_v17 }
 0x473   :  { %1109 = vmatmul.mubr.f32.vlgmr.msra.gmra.mrb[8].mxu0 %v1038_v23  ;;  %1180 = vmatmul.mubr.f32.vlgmr.msra.gmra.mrb[8].mxu1 %v1038_v23 }
 0x474   :  { %2249 = vmatpush1.bf16.msra.mxu0 %v2892_v42  ;;  %2281 = vmatpush1.bf16.msra.mxu1 %v2897_v46 }
 0x475   :  { %2251 = vmatprep.subr.bf16.mxu0 %v2902_v50  ;;  %2283 = vmatprep.subr.bf16.mxu1 %v2906_v56 }
 0x476   :  { %1283 = vmatprep.mubr.f32.mxu0 %v2780_v0  ;;  %1354 = vmatprep.mubr.f32.mxu1 %v2780_v0 }
 0x478   :  { %2253 = vmatpush1.bf16.msra.mxu0 %v2904_v55  ;;  %2285 = vmatpush1.bf16.msra.mxu1 %v2909_v59 }
 0x479   :  { %2255 = vmatprep.subr.bf16.mxu0 %v2914_v63  ;;  %2287 = vmatprep.subr.bf16.mxu1 %v2920_v6 }
 0x47c   :  { %2257 = vmatpush1.bf16.msra.mxu0 %v2918_v5  ;;  %2289 = vmatpush1.bf16.msra.mxu1 %v2923_v9 }
 0x47d   :  { %2259 = vmatprep.subr.bf16.mxu0 %v2928_v13  ;;  %2291 = vmatprep.subr.bf16.mxu1 %v2934_v19 }
 0x480   :  { %2261 = vmatpush1.bf16.msra.mxu0 %v2932_v18  ;;  %2293 = vmatpush1.bf16.msra.mxu1 %v2937_v22 }
 0x481   :  { %2263 = vmatprep.subr.bf16.mxu0 %v2942_v26  ;;  %2295 = vmatprep.subr.bf16.mxu1 %v2948_v32 }
 0x484   :  { %2265 = vmatpush1.bf16.msra.mxu0 %v2946_v31  ;;  %2297 = vmatpush1.bf16.msra.mxu1 %v2951_v35 }
 0x485   :  { %2267 = vmatprep.subr.bf16.mxu0 %v2956_v40  ;;  %2299 = vmatprep.subr.bf16.mxu1 %v2962_v49 }
 0x488   :  { %2269 = vmatpush1.bf16.msra.mxu0 %v2960_v48  ;;  %2301 = vmatpush1.bf16.msra.mxu1 %v2965_v53 }
 0x489   :  { %2271 = vmatprep.subr.bf16.mxu0 %v2968_v60  ;;  %2303 = vmatprep.subr.bf16.mxu1 %v2976_v8 }
 0x48c   :  { %2273 = vmatpush1.bf16.msra.mxu0 %v2972_v2  ;;  %2305 = vmatpush1.bf16.msra.mxu1 %v2978_v10 }
 0x48d   :  { %2275 = vmatprep.subr.bf16.mxu0 %v2981_v15  ;;  %2307 = vmatprep.subr.bf16.mxu1 %v2988_v27 }
 0x490   :  { %2277 = vmatpush1.bf16.msra.mxu0 %v2984_v21  ;;  %2309 = vmatpush1.bf16.msra.mxu1 %v2992_v28 }
 0x491   :  { %2311 = vmatprep.subr.bf16.mxu0 %v2890_v38  ;;  %2343 = vmatprep.subr.bf16.mxu1 %v2894_v43 }
 0x546   :  { %v1110_v12 = vpop.f32.mrb[8].mxu0  ;;  %v1181_v16 = vpop.f32.mrb[8].mxu1 }
 0x547   :  { %v2468_v14 = vadd.f32 %v1110_v12, %v3011_v36  ;;  %v1112_v25 = vpop.f32.mrb[9].mxu0  ;;  %v1183_v29 = vpop.f32.mrb[9].mxu1  ;;  %v2482_v41 = vadd.f32 %v1181_v16, %v3016_v45 }
 0x548   :  { %v2469_v33 = vadd.f32 %v1112_v25, %v3063_v24  ;;  %v2483_v44 = vadd.f32 %v1183_v29, %v3021_v61 }
 0x549   :  { %v1861_v37 = vmul.f32 -1.442695, %v2468_v14  ;;  %v1863_v47 = vmul.f32 -1.442695, %v2482_v41 }
 0x54a   :  { %v1862_v39 = vmul.f32 -1.442695, %v2469_v33 }
 0x54b   :  { %2590 = vpow2.f32 %v1861_v37 }
 0x54c   :  { %2592 = vpow2.f32 %v1862_v39 }
 0x54d   :  { %2594 = vtanh.f32 %v2483_v44 }
 0x54e   :  { %2596 = vpow2.f32 %v1863_v47 }
 0x555   :  { %v2591_v51 = vpop.eup %2590 }
 0x556   :  { %v1199_v52 = vadd.f32 1.0, %v2591_v51  ;;  %v2593_v30 = vpop.eup %2592 }
 0x557   :  { %v1200_v54 = vadd.f32 1.0, %v2593_v30  ;;  %v2595_v34 = vpop.eup %2594 }
 0x558   :  { %2598 = vrcp.f32 %v1199_v52  ;;  %v2597_v57 = vpop.eup %2596 }
 0x559   :  { %2600 = vrcp.f32 %v1200_v54  ;;  %v1201_v3 = vadd.f32 1.0, %v2597_v57 }
 0x55b   :  { %2602 = vrcp.f32 %v1201_v3 }
 0x562   :  { %v2599_v58 = vpop.eup %2598 }
 0x563   :  { %v1210_v62 = vmul.f32 %v2599_v58, %v2595_v34  ;;  %v2601_v1 = vpop.eup %2600 }
 0x564   :  { %v1209_v4 = vmul.f32 %v2601_v1, %v3154_v11 }
 0x565   :  { %v2603_v17 = vpop.eup %2602 }
 0x566   :  { %v3196_v7 = vadd.f32 %v1210_v62, %v1209_v4 }
 0x568   :  { %2604 = vtanh.f32 %v3196_v7 }
 0x572   :  { %v2605_v20 = vpop.eup %2604 }
 0x573   :  { %v1213_v23 = vmul.f32 %v2605_v20, %v2603_v17  ;;  %v1742_v20 = vld [vmem:[#allocation9 + $0x18] sm:$0xff] }
 0x575   :  { %1284 = vmatmul.mubr.f32.vlgmr.msra.gmra.mrb[10].mxu0 %v1213_v23  ;;  %1355 = vmatmul.mubr.f32.vlgmr.msra.gmra.mrb[10].mxu1 %v1213_v23 }
 0x576   :  { %2313 = vmatpush1.bf16.msra.mxu0 %v2892_v42  ;;  %2345 = vmatpush1.bf16.msra.mxu1 %v2897_v46 }
 0x577   :  { %2315 = vmatprep.subr.bf16.mxu0 %v2902_v50  ;;  %2347 = vmatprep.subr.bf16.mxu1 %v2906_v56 }
 0x578   :  { %1458 = vmatprep.mubr.f32.mxu0 %v2780_v0  ;;  %1529 = vmatprep.mubr.f32.mxu1 %v2780_v0 }
 0x57a   :  { %2317 = vmatpush1.bf16.msra.mxu0 %v2904_v55  ;;  %2349 = vmatpush1.bf16.msra.mxu1 %v2909_v59 }
 0x57b   :  { %2319 = vmatprep.subr.bf16.mxu0 %v2914_v63  ;;  %2351 = vmatprep.subr.bf16.mxu1 %v2920_v6 }
 0x57e   :  { %2321 = vmatpush1.bf16.msra.mxu0 %v2918_v5  ;;  %2353 = vmatpush1.bf16.msra.mxu1 %v2923_v9 }
 0x57f   :  { %2323 = vmatprep.subr.bf16.mxu0 %v2928_v13  ;;  %2355 = vmatprep.subr.bf16.mxu1 %v2934_v19 }
 0x582   :  { %2325 = vmatpush1.bf16.msra.mxu0 %v2932_v18  ;;  %2357 = vmatpush1.bf16.msra.mxu1 %v2937_v22 }
 0x583   :  { %2327 = vmatprep.subr.bf16.mxu0 %v2942_v26  ;;  %2359 = vmatprep.subr.bf16.mxu1 %v2948_v32 }
 0x586   :  { %2329 = vmatpush1.bf16.msra.mxu0 %v2946_v31  ;;  %2361 = vmatpush1.bf16.msra.mxu1 %v2951_v35 }
 0x587   :  { %2331 = vmatprep.subr.bf16.mxu0 %v2956_v40  ;;  %2363 = vmatprep.subr.bf16.mxu1 %v2962_v49 }
 0x58a   :  { %2333 = vmatpush1.bf16.msra.mxu0 %v2960_v48  ;;  %2365 = vmatpush1.bf16.msra.mxu1 %v2965_v53 }
 0x58b   :  { %2335 = vmatprep.subr.bf16.mxu0 %v2968_v60  ;;  %2367 = vmatprep.subr.bf16.mxu1 %v2976_v8 }
 0x58e   :  { %2337 = vmatpush1.bf16.msra.mxu0 %v2972_v2  ;;  %2369 = vmatpush1.bf16.msra.mxu1 %v2978_v10 }
 0x58f   :  { %2339 = vmatprep.subr.bf16.mxu0 %v2981_v15  ;;  %2371 = vmatprep.subr.bf16.mxu1 %v2988_v27 }
 0x592   :  { %2341 = vmatpush1.bf16.msra.mxu0 %v2984_v21  ;;  %2373 = vmatpush1.bf16.msra.mxu1 %v2992_v28 }
 0x593   :  { %2375 = vmatprep.subr.bf16.mxu0 %v2890_v38  ;;  %2407 = vmatprep.subr.bf16.mxu1 %v2894_v43 }
 0x648   :  { %v1285_v11 = vpop.f32.mrb[10].mxu0  ;;  %v1356_v12 = vpop.f32.mrb[10].mxu1 }
 0x649   :  { %v2470_v16 = vadd.f32 %v1285_v11, %v3011_v36  ;;  %v1287_v14 = vpop.f32.mrb[11].mxu0  ;;  %v1358_v25 = vpop.f32.mrb[11].mxu1  ;;  %v2484_v39 = vadd.f32 %v1356_v12, %v3016_v45  ;;  %v1743_v11 = vld [vmem:[#allocation9 + $0x20] sm:$0xff]  ;;  %v1744_v12 = vld [vmem:[#allocation9 + $0x28] sm:$0xff] }
 0x64a   :  { %v2471_v29 = vadd.f32 %v1287_v14, %v3063_v24  ;;  %v2485_v41 = vadd.f32 %v1358_v25, %v3021_v61  ;;  %v1745_v14 = vld [vmem:[#allocation9 + $0x30] sm:$0xff]  ;;  %v1746_v25 = vld [vmem:[#allocation9 + $0x38] sm:$0xff] }
 0x64b   :  { %v1864_v33 = vmul.f32 -1.442695, %v2470_v16  ;;  %v1866_v44 = vmul.f32 -1.442695, %v2484_v39  ;;  %v2445_v16 = vpack.c.bf16 %v1744_v12, %v1743_v11 }
 0x64c   :  { %v1865_v37 = vmul.f32 -1.442695, %v2471_v29  ;;  %v2448_v29 = vpack.c.bf16 %v1746_v25, %v1745_v14 }
 0x64d   :  { %2606 = vpow2.f32 %v1864_v33  ;;  %v1747_v33 = vld [vmem:[#allocation9 + $0x40] sm:$0xff] }
 0x64e   :  { %2608 = vpow2.f32 %v1865_v37  ;;  %v1748_v37 = vld [vmem:[#allocation9 + $0x48] sm:$0xff] }
 0x64f   :  { %2610 = vtanh.f32 %v2485_v41  ;;  %v2451_v39 = vpack.c.bf16 %v1748_v37, %v1747_v33  ;;  %v1749_v41 = vld [vmem:[#allocation9 + $0x50] sm:$0xff] }
 0x650   :  { %2612 = vpow2.f32 %v1866_v44  ;;  %v1750_v44 = vld [vmem:[#allocation9 + $0x58] sm:$0xff] }
 0x657   :  { %v2607_v38 = vpop.eup %2606 }
 0x658   :  { %v1374_v47 = vadd.f32 1.0, %v2607_v38  ;;  %v2609_v43 = vpop.eup %2608  ;;  %v2454_v38 = vpack.c.bf16 %v1750_v44, %v1749_v41 }
 0x659   :  { %v1375_v51 = vadd.f32 1.0, %v2609_v43  ;;  %v2611_v52 = vpop.eup %2610  ;;  %v1752_v43 = vld [vmem:[#allocation9 + $0x68] sm:$0xff] }
 0x65a   :  { %2614 = vrcp.f32 %v1374_v47  ;;  %v2613_v30 = vpop.eup %2612  ;;  %v1751_v47 = vld [vmem:[#allocation9 + $0x60] sm:$0xff] }
 0x65b   :  { %2616 = vrcp.f32 %v1375_v51  ;;  %v1376_v58 = vadd.f32 1.0, %v2613_v30  ;;  %v2457_v51 = vpack.c.bf16 %v1752_v43, %v1751_v47  ;;  %v1754_v30 = vld [vmem:[#allocation9 + $0x78] sm:$0xff] }
 0x65d   :  { %2618 = vrcp.f32 %v1376_v58 }
 0x664   :  { %v2615_v54 = vpop.eup %2614 }
 0x665   :  { %v1385_v34 = vmul.f32 %v2615_v54, %v2611_v52  ;;  %v2617_v57 = vpop.eup %2616  ;;  %v1753_v52 = vld [vmem:[#allocation9 + $0x70] sm:$0xff] }
 0x666   :  { %v1384_v62 = vmul.f32 %v2617_v57, %v3196_v7  ;;  %v1741_v7 = vld [vmem:[#allocation9 + $0x10] sm:$0xff]  ;;  %v2460_v54 = vpack.c.bf16 %v1754_v30, %v1753_v52 }
 0x667   :  { %v2619_v3 = vpop.eup %2618  ;;  %v2442_v23 = vpack.c.bf16 %v1742_v20, %v1741_v7 }
 0x668   :  { %v3238_v1 = vadd.f32 %v1385_v34, %v1384_v62 }
 0x66a   :  { %2620 = vtanh.f32 %v3238_v1 }
 0x674   :  { %v2621_v4 = vpop.eup %2620 }
 0x675   :  { %v1388_v17 = vmul.f32 %v2621_v4, %v2619_v3 }
 0x677   :  { %1459 = vmatmul.mubr.f32.vlgmr.msra.gmra.mrb[12].mxu0 %v1388_v17  ;;  %1530 = vmatmul.mubr.f32.vlgmr.msra.gmra.mrb[12].mxu1 %v1388_v17 }
 0x678   :  { %2377 = vmatpush1.bf16.msra.mxu0 %v2892_v42  ;;  %2409 = vmatpush1.bf16.msra.mxu1 %v2897_v46 }
 0x679   :  { %2379 = vmatprep.subr.bf16.mxu0 %v2902_v50  ;;  %2411 = vmatprep.subr.bf16.mxu1 %v2906_v56 }
 0x67a   :  { %1633 = vmatprep.mubr.f32.mxu0 %v2780_v0  ;;  %1704 = vmatprep.mubr.f32.mxu1 %v2780_v0 }
 0x67c   :  { %2381 = vmatpush1.bf16.msra.mxu0 %v2904_v55  ;;  %2413 = vmatpush1.bf16.msra.mxu1 %v2909_v59 }
 0x67d   :  { %2383 = vmatprep.subr.bf16.mxu0 %v2914_v63  ;;  %2415 = vmatprep.subr.bf16.mxu1 %v2920_v6 }
 0x680   :  { %2385 = vmatpush1.bf16.msra.mxu0 %v2918_v5  ;;  %2417 = vmatpush1.bf16.msra.mxu1 %v2923_v9 }
 0x681   :  { %2387 = vmatprep.subr.bf16.mxu0 %v2928_v13  ;;  %2419 = vmatprep.subr.bf16.mxu1 %v2934_v19 }
 0x684   :  { %2389 = vmatpush1.bf16.msra.mxu0 %v2932_v18  ;;  %2421 = vmatpush1.bf16.msra.mxu1 %v2937_v22 }
 0x685   :  { %2391 = vmatprep.subr.bf16.mxu0 %v2942_v26  ;;  %2423 = vmatprep.subr.bf16.mxu1 %v2948_v32 }
 0x688   :  { %2393 = vmatpush1.bf16.msra.mxu0 %v2946_v31  ;;  %2425 = vmatpush1.bf16.msra.mxu1 %v2951_v35 }
 0x689   :  { %2395 = vmatprep.subr.bf16.mxu0 %v2956_v40  ;;  %2427 = vmatprep.subr.bf16.mxu1 %v2962_v49 }
 0x68c   :  { %2397 = vmatpush1.bf16.msra.mxu0 %v2960_v48  ;;  %2429 = vmatpush1.bf16.msra.mxu1 %v2965_v53 }
 0x68d   :  { %2399 = vmatprep.subr.bf16.mxu0 %v2968_v60  ;;  %2431 = vmatprep.subr.bf16.mxu1 %v2976_v8 }
 0x690   :  { %2401 = vmatpush1.bf16.msra.mxu0 %v2972_v2  ;;  %2433 = vmatpush1.bf16.msra.mxu1 %v2978_v10 }
 0x691   :  { %2403 = vmatprep.subr.bf16.mxu0 %v2981_v15  ;;  %2435 = vmatprep.subr.bf16.mxu1 %v2988_v27  ;;  %v1739_v15 = vld [vmem:[#allocation9] sm:$0xff] }
 0x694   :  { %2405 = vmatpush1.bf16.msra.mxu0 %v2984_v21  ;;  %2437 = vmatpush1.bf16.msra.mxu1 %v2992_v28  ;;  %v1740_v21 = vld [vmem:[#allocation9 + $0x8] sm:$0xff]  ;;  %v2781_v28 = vmov 0.0|0.0  }
 0x695   :  { %v2439_v27 = vpack.c.bf16 %v1740_v21, %v1739_v15  ;;  %2438 = vmatprep.subr.bf16.mxu0 %v2781_v28 }
 0x74a   :  { %v1460_v42 = vpop.f32.mrb[12].mxu0  ;;  %v1531_v46 = vpop.f32.mrb[12].mxu1 }
 0x74b   :  { %v2472_v50 = vadd.f32 %v1460_v42, %v3011_v36  ;;  %v1462_v55 = vpop.f32.mrb[13].mxu0  ;;  %v1533_v56 = vpop.f32.mrb[13].mxu1  ;;  %v2486_v6 = vadd.f32 %v1531_v46, %v3016_v45 }
 0x74c   :  { %v2473_v59 = vadd.f32 %v1462_v55, %v3063_v24  ;;  %v2487_v9 = vadd.f32 %v1533_v56, %v3021_v61 }
 0x74d   :  { %v1867_v63 = vmul.f32 -1.442695, %v2472_v50  ;;  %v1869_v13 = vmul.f32 -1.442695, %v2486_v6 }
 0x74e   :  { %v1868_v5 = vmul.f32 -1.442695, %v2473_v59 }
 0x74f   :  { %2622 = vpow2.f32 %v1867_v63 }
 0x750   :  { %2624 = vpow2.f32 %v1868_v5 }
 0x751   :  { %2626 = vtanh.f32 %v2487_v9 }
 0x752   :  { %2628 = vpow2.f32 %v1869_v13 }
 0x759   :  { %v2623_v18 = vpop.eup %2622 }
 0x75a   :  { %v1549_v19 = vadd.f32 1.0, %v2623_v18  ;;  %v2625_v22 = vpop.eup %2624 }
 0x75b   :  { %v1550_v26 = vadd.f32 1.0, %v2625_v22  ;;  %v2627_v31 = vpop.eup %2626  ;;  %v1873_v22 = vld [vmem:[%s3307_s5] ss:$0 sm:$0xff] }
 0x75c   :  { %2630 = vrcp.f32 %v1549_v19  ;;  %v2629_v32 = vpop.eup %2628 }
 0x75d   :  { %2632 = vrcp.f32 %v1550_v26  ;;  %v1551_v49 = vadd.f32 1.0, %v2629_v32 }
 0x75f   :  { %2634 = vrcp.f32 %v1551_v49 }
 0x766   :  { %v2631_v35 = vpop.eup %2630 }
 0x767   :  { %v1560_v40 = vmul.f32 %v2631_v35, %v2627_v31  ;;  %v2633_v48 = vpop.eup %2632 }
 0x768   :  { %v1559_v53 = vmul.f32 %v2633_v48, %v3238_v1 }
 0x769   :  { %v2635_v2 = vpop.eup %2634 }
 0x76a   :  { %v3278_v60 = vadd.f32 %v1560_v40, %v1559_v53 }
 0x76c   :  { %2636 = vtanh.f32 %v3278_v60 }
 0x776   :  { %v2637_v8 = vpop.eup %2636 }
 0x777   :  { %v1563_v10 = vmul.f32 %v2637_v8, %v2635_v2 }
 0x779   :  { %1634 = vmatmul.mubr.f32.vlgmr.msra.gmra.mrb[14].mxu0 %v1563_v10  ;;  %1705 = vmatmul.mubr.f32.vlgmr.msra.gmra.mrb[14].mxu1 %v1563_v10 }
 0x77a   :  { %2440 = vmatpush3.bf16.msra.mxu0 %v2439_v27  ;;  %1923 = vmatprep.mubr.msk.f32.mxu0 %vm2782_vm0, %v2780_v0 }
 0x77b   :  { %2441 = vmatprep.subr.bf16.mxu0 %v2781_v28 }
 0x77e   :  { %2443 = vmatpush3.bf16.msra.mxu0 %v2442_v23 }
 0x77f   :  { %2444 = vmatprep.subr.bf16.mxu0 %v2781_v28 }
 0x782   :  { %2446 = vmatpush3.bf16.msra.mxu0 %v2445_v16 }
 0x783   :  { %2447 = vmatprep.subr.bf16.mxu0 %v2781_v28 }
 0x786   :  { %2449 = vmatpush3.bf16.msra.mxu0 %v2448_v29 }
 0x787   :  { %2450 = vmatprep.subr.bf16.mxu0 %v2781_v28 }
 0x78a   :  { %2452 = vmatpush3.bf16.msra.mxu0 %v2451_v39 }
 0x78b   :  { %2453 = vmatprep.subr.bf16.mxu0 %v2781_v28 }
 0x78e   :  { %2455 = vmatpush3.bf16.msra.mxu0 %v2454_v38 }
 0x78f   :  { %2456 = vmatprep.subr.bf16.mxu0 %v2781_v28 }
 0x792   :  { %2458 = vmatpush3.bf16.msra.mxu0 %v2457_v51 }
 0x793   :  { %2459 = vmatprep.subr.bf16.mxu0 %v2781_v28 }
 0x796   :  { %2461 = vmatpush3.bf16.msra.mxu0 %v2460_v54 }
 0x84c   :  { %v1635_v34 = vpop.f32.mrb[14].mxu0  ;;  %v1706_v57 = vpop.f32.mrb[14].mxu1 }
 0x84d   :  { %v2474_v58 = vadd.f32 %v1635_v34, %v3011_v36  ;;  %v1637_v62 = vpop.f32.mrb[15].mxu0  ;;  %v1708_v1 = vpop.f32.mrb[15].mxu1  ;;  %v2488_v0 = vadd.f32 %v1706_v57, %v3016_v45 }
 0x84e   :  { %v2475_v3 = vadd.f32 %v1637_v62, %v3063_v24  ;;  %v2489_v42 = vadd.f32 %v1708_v1, %v3021_v61 }
 0x84f   :  { %v1870_v4 = vmul.f32 -1.442695, %v2474_v58  ;;  %v1872_v46 = vmul.f32 -1.442695, %v2488_v0 }
 0x850   :  { %v1871_v17 = vmul.f32 -1.442695, %v2475_v3 }
 0x851   :  { %2638 = vpow2.f32 %v1870_v4 }
 0x852   :  { %2640 = vpow2.f32 %v1871_v17 }
 0x853   :  { %2642 = vtanh.f32 %v2489_v42 }
 0x854   :  { %2644 = vpow2.f32 %v1872_v46 }
 0x85b   :  { %v2639_v50 = vpop.eup %2638 }
 0x85c   :  { %v1724_v55 = vadd.f32 1.0, %v2639_v50  ;;  %v2641_v56 = vpop.eup %2640 }
 0x85d   :  { %v1725_v36 = vadd.f32 1.0, %v2641_v56  ;;  %v2643_v59 = vpop.eup %2642 }
 0x85e   :  { %2646 = vrcp.f32 %v1724_v55  ;;  %v2645_v63 = vpop.eup %2644 }
 0x85f   :  { %2648 = vrcp.f32 %v1725_v36  ;;  %v1726_v9 = vadd.f32 1.0, %v2645_v63 }
 0x861   :  { %2650 = vrcp.f32 %v1726_v9 }
 0x868   :  { %v2647_v24 = vpop.eup %2646 }
 0x869   :  { %v1735_v5 = vmul.f32 %v2647_v24, %v2643_v59  ;;  %v2649_v6 = vpop.eup %2648 }
 0x86a   :  { %v1734_v13 = vmul.f32 %v2649_v6, %v3278_v60 }
 0x86b   :  { %v2651_v61 = vpop.eup %2650 }
 0x86c   :  { %v1736_v45 = vadd.f32 %v1735_v5, %v1734_v13 }
 0x86e   :  { %2652 = vtanh.f32 %v1736_v45 }
 0x878   :  { %v2653_v18 = vpop.eup %2652 }
 0x879   :  { %v1738_v19 = vmul.f32 %v2653_v18, %v2651_v61 }
 0x87b   :  { %1924 = vmatmul.mubr.f32.vlgmr.msra.gmra.mrb[16].mxu0 %v1738_v19 }
 0x94e   :  { %v1828_v26 = vpop.f32.mrb[16].mxu0 }
 0x94f   :  { %v1829_v31 = vadd.f32 %v1873_v22, %v1828_v26  ;;  %v1925_v32 = vpop.f32.mrb[17].mxu0 }
 0x951   :  { %1832 = vst [vmem:[#allocation11] sm:$0xff] %v1829_v31 }
 0x952   :  { %2753 = shalt.err (!%p2750_p8)
}
 0x953   :  { %s2754_s28 = scalar_lea.hbm %s3308_s6, 128 }
 0x954   :  { %p2755_p9 = scmp.ne.s32.totalorder %s3308_s6, %s2754_s28  ;;  %p2758_p10 = scmp.lt.u32.totalorder %s2754_s28, %s3308_s6 }
 0x956   :  { %p2760_p11 = pnand %p2758_p10, %p2755_p9 }
 0x958   :  { %2763 = shalt.err (!%p2760_p11)
}
 0x959   :  { %1842 = dma.vmem_to_hbm [thread:$0]  %s1840_s24, 128, %s3308_s6, [#allocation5]  }
 0x95a   :  { %2770 = dma.done.wait [#allocation5], 128  }
 0x95b   :  { %2771 = vsyncadd [#allocation5], 4294967168 }
 0x95c   :  { %1846 = vsyncpa [#allocation4], 1 }
 0x95d   :  { %1847 = vsyncpa [#allocation7], 1 }
 0x95e   :  { %1848 = vsyncpa [#allocation10], 1 }
 0x95f   :  { %1849 = vsyncpa [#allocation5], 1 }

</bundles_post_ra>
